<compile_context>
chip_gen: v7x
topology: tpu7x:2x2x1
jax: 0.10.0
libtpu: 0.0.40
codegen_flags: <defaults>
</compile_context>

<pallas_src>
import functools

import jax
import jax.numpy as jnp
import numpy as np
from jax.experimental import pallas as pl
from jax.experimental.pallas import tpu as pltpu

VMEM_LIMIT = 32 * 1024 * 1024   # <= 32-40 MiB: fits v7x (64 MiB phys), overrides v5e 16 MiB default


def _round_up(x, m):
    return ((x + m - 1) // m) * m


def _pick_lane_tile(L, cap=4096):
    """Lane-tile for the weighted-sum kernel: L itself when small, else a 128-multiple divisor."""
    if L <= cap:
        return L
    for t in (cap, 2048, 1024, 512, 256, 128):
        if L % t == 0:
            return t
    return 128


# --------------------------------------------------------------------------------------
# Kernels
# --------------------------------------------------------------------------------------

def conv_bn_relu_kernel(x_ref, w_ref, t_ref, mask_ref, out_ref, gap_ref, *, K, Wp, shift):
    """One batch image of one SK branch: grouped conv (tap accumulation) + folded BN + ReLU.

    x_ref   : [1, C, Lin] bf16  zero-padded image, flattened row-major over (hp, wp)
    w_ref   : [K*K, C, C] bf16  per-tap block-diagonal grouped-conv weights (BN scale folded)
    t_ref   : [C, 1]      f32   folded BN shift (includes conv bias)
    mask_ref: [1, L]      f32   1.0 on valid output columns, 0.0 on row-pitch garbage / tail
    out_ref : [1, C, L]   bf16  branch feature map (channel-major, padded row pitch Wp)
    gap_ref : [1, C, 1]   f32   per-channel spatial sum (feeds the global average pool)
    """
    C = out_ref.shape[1]
    L = out_ref.shape[2]
    x = x_ref[0]                                        # [C, Lin] bf16, read once
    acc = jnp.zeros((C, L), jnp.float32)
    for kh in range(K):
        for kw in range(K):
            off = (kh + shift) * Wp + (kw + shift)      # static lane offset for this tap
            xs = x[:, off:off + L]                      # [C, L] bf16 shifted view
            acc = acc + jnp.dot(w_ref[kh * K + kw], xs,
                                preferred_element_type=jnp.float32)
    y = jnp.maximum(acc + t_ref[...], 0.0) * mask_ref[...]     # f32 epilogue, garbage -> 0
    out_ref[0] = y.astype(out_ref.dtype)
    gap_ref[0] = jnp.sum(y, axis=1, keepdims=True)              # free under DMA-bound kernel


def weighted_sum_kernel(att_ref, *refs):
    """out[b, :, tile] = sum_m feas_m[b, :, tile] * att[m, b, :]   (bf16 in, f32 accumulate).

    att_ref    : [M, 1, C, 1] f32
    feas_m refs: [1, C, TILE_L] bf16  (one per branch)
    out_ref    : [1, C, TILE_L] f32
    """
    *feas_refs, out_ref = refs
    C, TL = out_ref.shape[1], out_ref.shape[2]
    acc = jnp.zeros((C, TL), jnp.float32)
    for m, fea_ref in enumerate(feas_refs):
        acc = acc + fea_ref[0].astype(jnp.float32) * att_ref[m][0]   # [C,TL] * [C,1]
    out_ref[0] = acc.astype(out_ref.dtype)


# --------------------------------------------------------------------------------------
# Wrapper
# --------------------------------------------------------------------------------------

def _sk_branch_conv(xf, mask, w_pt, bias, bn, *, K, G, pad_shift, Wp, L):
    """One SK branch on the shared padded layout. Returns (feas [B,C,L] bf16, gap [B,C,1] f32)."""
    B, C, Lin = xf.shape
    Cg = C // G
    eps = 1e-5

    gamma, beta, mean, var = bn
    s = gamma / jnp.sqrt(var + eps)
    t = ((bias - mean) * s + beta).astype(jnp.float32).reshape(C, 1)

    # Per-tap block-diagonal [C, C] weights (grouped conv == block-diag dense), BN scale folded.
    # PyTorch layout: w_pt[g*Cg + co, ci_in_group, kh, kw]
    w_g = w_pt.reshape(G, Cg, Cg, K, K)
    wtaps = jnp.zeros((K * K, C, C), jnp.float32)
    for g in range(G):
        blk = jnp.transpose(w_g[g], (2, 3, 0, 1)).reshape(K * K, Cg, Cg)   # [tap, co, ci]
        wtaps = wtaps.at[:, g * Cg:(g + 1) * Cg, g * Cg:(g + 1) * Cg].set(blk)
    wtaps = (wtaps * s[None, :, None]).astype(jnp.bfloat16)                # fold BN scale

    out, gap = pl.pallas_call(
        functools.partial(conv_bn_relu_kernel, K=K, Wp=Wp, shift=pad_shift),
        grid=(B,),
        in_specs=[
            pl.BlockSpec((1, C, Lin), lambda b: (b, 0, 0)),       # one padded image per step
            pl.BlockSpec((K * K, C, C), lambda b: (0, 0, 0)),     # block-constant weights
            pl.BlockSpec((C, 1), lambda b: (0, 0)),
            pl.BlockSpec((1, L), lambda b: (0, 0)),
        ],
        out_specs=(
            pl.BlockSpec((1, C, L), lambda b: (b, 0, 0)),
            pl.BlockSpec((1, C, 1), lambda b: (b, 0, 0)),
        ),
        out_shape=(
            jax.ShapeDtypeStruct((B, C, L), jnp.bfloat16),        # feas in bf16
            jax.ShapeDtypeStruct((B, C, 1), jnp.float32),         # GAP partial sums
        ),
        compiler_params=pltpu.CompilerParams(
            dimension_semantics=("parallel",),
            vmem_limit_bytes=VMEM_LIMIT),
    )(xf, wtaps, t, mask)
    return out, gap


def sk_conv_forward(x, params, *, M, G):
    """SKConv forward. x: [B, C, H, W] (NCHW, like the PyTorch module). Returns NCHW f32."""
    B, C, H, W = x.shape
    # Shared channel-major padded layout for ALL branches (padding = max branch padding).
    P_max = M                              # branch m uses K=3+2m, P=1+m  ->  max P = M
    Hp, Wp = H + 2 * P_max, W + 2 * P_max
    L = _round_up(H * Wp, 128)             # lane-dense output pitch (multiple of 128)
    Lin = L + 2 * P_max * Wp + 2 * P_max   # max lane offset any tap ever reads

    xp = jnp.pad(x.astype(jnp.float32), ((0, 0), (0, 0), (P_max, P_max), (P_max, P_max)))
    xf = jnp.pad(xp.reshape(B, C, Hp * Wp),
                 ((0, 0), (0, 0), (0, Lin - Hp * Wp))).astype(jnp.bfloat16)

    # Validity mask over padded-pitch output columns (row-pitch garbage / tail -> 0).
    cols = np.arange(L)
    mask = jnp.asarray(((cols < H * Wp) & ((cols % Wp) < W)).astype(np.float32)).reshape(1, L)

    # --- per-branch grouped conv + BN + ReLU (Pallas, tap accumulation in VMEM) ----------
    feas_list, gap_list = [], []
    for m in range(M):
        K = 3 + 2 * m
        fea, gap = _sk_branch_conv(
            xf, mask, params["conv_w"][m], params["conv_b"][m], params["bn"][m],
            K=K, G=G, pad_shift=P_max - (1 + m), Wp=Wp, L=L)
        feas_list.append(fea)
        gap_list.append(gap)

    # --- attention weights: tiny fc chain, plain XLA (uses the in-kernel GAP sums) -------
    fea_s = sum(gap_list)[:, :, 0] / float(H * W)                    # [B, C]
    fea_z = fea_s @ params["fc_w"] + params["fc_b"]                  # [B, D]
    logits = (jnp.einsum("bd,mdc->mbc", fea_z, params["fcs_w"])
              + params["fcs_b"][:, None, :])                         # [M, B, C]
    att = jax.nn.softmax(logits, axis=0)                             # softmax over branches
    att = att[..., None].astype(jnp.float32)                         # [M, B, C, 1]

    # --- branch-weighted sum: stream bf16 feas over a (batch, lane-tile) grid ------------
    TILE_L = _pick_lane_tile(L)
    fused = pl.pallas_call(
        weighted_sum_kernel,
        grid=(B, L // TILE_L),
        in_specs=([pl.BlockSpec((M, 1, C, 1), lambda b, t: (0, b, 0, 0))]
                  + [pl.BlockSpec((1, C, TILE_L), lambda b, t: (b, 0, t)) for _ in range(M)]),
        out_specs=pl.BlockSpec((1, C, TILE_L), lambda b, t: (b, 0, t)),
        out_shape=jax.ShapeDtypeStruct((B, C, L), jnp.float32),
        compiler_params=pltpu.CompilerParams(
            dimension_semantics=("parallel", "parallel"),
            vmem_limit_bytes=VMEM_LIMIT),
    )(att, *feas_list)

    # Drop row-pitch padding columns; result is already NCHW (no transpose needed).
    return fused[:, :, :H * Wp].reshape(B, C, H, Wp)[:, :, :, :W]


# --------------------------------------------------------------------------------------
# Pure-JAX reference (matches the PyTorch forward with eval-mode BN)
# --------------------------------------------------------------------------------------

def sk_conv_reference(x, params, *, M, G):
    eps = 1e-5
    feas = []
    for m in range(M):
        P = 1 + m
        w = params["conv_w"][m]
        b = params["conv_b"][m]
        gamma, beta, mean, var = params["bn"][m]
        y = jax.lax.conv_general_dilated(
            x, w, window_strides=(1, 1), padding=[(P, P), (P, P)],
            dimension_numbers=("NCHW", "OIHW", "NCHW"), feature_group_count=G)
        y = y + b[None, :, None, None]
        y = gamma[None, :, None, None] * (y - mean[None, :, None, None]) \
            / jnp.sqrt(var[None, :, None, None] + eps) + beta[None, :, None, None]
        feas.append(jnp.maximum(y, 0.0))
    feas = jnp.stack(feas, axis=1)                       # [B, M, C, H, W]
    fea_U = feas.sum(axis=1)
    fea_s = fea_U.mean(axis=(2, 3))                      # [B, C]
    fea_z = fea_s @ params["fc_w"] + params["fc_b"]      # [B, D]
    vecs = jnp.stack([fea_z @ params["fcs_w"][m] + params["fcs_b"][m]
                      for m in range(M)], axis=1)        # [B, M, C]
    att = jax.nn.softmax(vecs, axis=1)
    return (feas * att[:, :, :, None, None]).sum(axis=1)


if __name__ == "__main__":
    # SKConv(features=16, WH=16, M=2, G=2, r=2, stride=1, L=32) -> d = max(16//2, 32) = 32
    B, C, H, W = 2, 16, 16, 16
    M, G, r, Lmin = 2, 2, 2, 32
    d = max(C // r, Lmin)
    Cg = C // G

    key = jax.random.PRNGKey(0)
    ks = iter(jax.random.split(key, 32))

    params = {"conv_w": [], "conv_b": [], "bn": []}
    for m in range(M):
        K = 3 + 2 * m
        params["conv_w"].append(0.1 * jax.random.normal(next(ks), (C, Cg, K, K), jnp.float32))
        params["conv_b"].append(0.1 * jax.random.normal(next(ks), (C,), jnp.float32))
        gamma = 1.0 + 0.1 * jax.random.normal(next(ks), (C,), jnp.float32)
        beta = 0.1 * jax.random.normal(next(ks), (C,), jnp.float32)
        mean = 0.1 * jax.random.normal(next(ks), (C,), jnp.float32)
        var = 1.0 + 0.1 * jnp.abs(jax.random.normal(next(ks), (C,), jnp.float32))
        params["bn"].append((gamma, beta, mean, var))
    # fc weights stored pre-transposed (y = x @ W + b)
    params["fc_w"] = 0.1 * jax.random.normal(next(ks), (C, d), jnp.float32)
    params["fc_b"] = 0.1 * jax.random.normal(next(ks), (d,), jnp.float32)
    params["fcs_w"] = 0.1 * jax.random.normal(next(ks), (M, d, C), jnp.float32)
    params["fcs_b"] = 0.1 * jax.random.normal(next(ks), (M, C), jnp.float32)

    x = jax.random.normal(next(ks), (B, C, H, W), jnp.float32)

    forward = jax.jit(functools.partial(sk_conv_forward, M=M, G=G))
    out = jax.block_until_ready(forward(x, params))

    ref = sk_conv_reference(x, params, M=M, G=G)
    assert out.shape == (B, C, H, W), out.shape
    # bf16 matmul operands + bf16 feas storage (f32 accumulation) -> 2e-2 vs full-f32 reference.
    if not np.allclose(np.asarray(out), np.asarray(ref), rtol=2e-2, atol=2e-2):
        raise AssertionError(
            f"mismatch: max abs diff = {np.max(np.abs(np.asarray(out) - np.asarray(ref)))}")
    print("KERNEL_OK")
</pallas_src>

<mosaic_0001>
module attributes {stable_mosaic.version = 11 : i64} {
  func.func @conv_bn_relu_kernel(%arg0: i32, %arg1: memref<1x16x468xbf16, #tpu.memory_space<vmem>>, %arg2: memref<25x16x16xbf16, #tpu.memory_space<vmem>>, %arg3: memref<16x1xf32, #tpu.memory_space<vmem>>, %arg4: memref<1x384xf32, #tpu.memory_space<vmem>>, %arg5: memref<1x16x384xbf16, #tpu.memory_space<vmem>>, %arg6: memref<1x16x1xf32, #tpu.memory_space<vmem>>) attributes {dimension_semantics = [#tpu.dimension_semantics<parallel>], iteration_bounds = array<i64: 2>, scalar_prefetch = 0 : i64, scratch_operands = 0 : i64, tpu.core_type = #tpu.core_type<tc>, window_params = [{transform_indices = @transform_0, window_bounds = array<i64: 1, 16, 468>}, {pipeline_mode = #tpu.pipeline_mode<synchronous>, transform_indices = @transform_1, window_bounds = array<i64: 25, 16, 16>}, {pipeline_mode = #tpu.pipeline_mode<synchronous>, transform_indices = @transform_2, window_bounds = array<i64: 16, 1>}, {pipeline_mode = #tpu.pipeline_mode<synchronous>, transform_indices = @transform_3, window_bounds = array<i64: 1, 384>}, {transform_indices = @transform_4, window_bounds = array<i64: 1, 16, 384>}, {transform_indices = @transform_5, window_bounds = array<i64: 1, 16, 1>}]} {
    %c0 = arith.constant 0 : index
    %c0_0 = arith.constant 0 : index
    %c0_1 = arith.constant 0 : index
    %0 = vector.load %arg1[%c0, %c0_0, %c0_1] : memref<1x16x468xbf16, #tpu.memory_space<vmem>>, vector<1x16x468xbf16>
    %1 = vector.shape_cast %0 : vector<1x16x468xbf16> to vector<16x468xbf16>
    %cst = arith.constant 0.000000e+00 : f32
    %2 = vector.broadcast %cst : f32 to vector<16x384xf32>
    %3 = vector.extract_strided_slice %1 {offsets = [0, 0], sizes = [16, 384], strides = [1, 1]} : vector<16x468xbf16> to vector<16x384xbf16>
    %c0_2 = arith.constant 0 : index
    %c0_3 = arith.constant 0 : index
    %c0_4 = arith.constant 0 : index
    %4 = vector.load %arg2[%c0_2, %c0_3, %c0_4] : memref<25x16x16xbf16, #tpu.memory_space<vmem>>, vector<1x16x16xbf16>
    %5 = vector.shape_cast %4 : vector<1x16x16xbf16> to vector<16x16xbf16>
    %cst_5 = arith.constant dense<0.000000e+00> : vector<16x384xf32>
    %6 = tpu.matmul %5, %3, %cst_5 {dimension_numbers = #tpu.dot_dimension_numbers<[1], [0], [0], [1], [0, 0, 1, 1], [], []>} : vector<16x16xbf16>, vector<16x384xbf16>, vector<16x384xf32> -> vector<16x384xf32>
    %7 = arith.addf %2, %6 : vector<16x384xf32>
    %8 = vector.extract_strided_slice %1 {offsets = [0, 1], sizes = [16, 384], strides = [1, 1]} : vector<16x468xbf16> to vector<16x384xbf16>
    %c1 = arith.constant 1 : index
    %c0_6 = arith.constant 0 : index
    %c0_7 = arith.constant 0 : index
    %9 = vector.load %arg2[%c1, %c0_6, %c0_7] : memref<25x16x16xbf16, #tpu.memory_space<vmem>>, vector<1x16x16xbf16>
    %10 = vector.shape_cast %9 : vector<1x16x16xbf16> to vector<16x16xbf16>
    %cst_8 = arith.constant dense<0.000000e+00> : vector<16x384xf32>
    %11 = tpu.matmul %10, %8, %cst_8 {dimension_numbers = #tpu.dot_dimension_numbers<[1], [0], [0], [1], [0, 0, 1, 1], [], []>} : vector<16x16xbf16>, vector<16x384xbf16>, vector<16x384xf32> -> vector<16x384xf32>
    %12 = arith.addf %7, %11 : vector<16x384xf32>
    %13 = vector.extract_strided_slice %1 {offsets = [0, 2], sizes = [16, 384], strides = [1, 1]} : vector<16x468xbf16> to vector<16x384xbf16>
    %c2 = arith.constant 2 : index
    %c0_9 = arith.constant 0 : index
    %c0_10 = arith.constant 0 : index
    %14 = vector.load %arg2[%c2, %c0_9, %c0_10] : memref<25x16x16xbf16, #tpu.memory_space<vmem>>, vector<1x16x16xbf16>
    %15 = vector.shape_cast %14 : vector<1x16x16xbf16> to vector<16x16xbf16>
    %cst_11 = arith.constant dense<0.000000e+00> : vector<16x384xf32>
    %16 = tpu.matmul %15, %13, %cst_11 {dimension_numbers = #tpu.dot_dimension_numbers<[1], [0], [0], [1], [0, 0, 1, 1], [], []>} : vector<16x16xbf16>, vector<16x384xbf16>, vector<16x384xf32> -> vector<16x384xf32>
    %17 = arith.addf %12, %16 : vector<16x384xf32>
    %18 = vector.extract_strided_slice %1 {offsets = [0, 3], sizes = [16, 384], strides = [1, 1]} : vector<16x468xbf16> to vector<16x384xbf16>
    %c3 = arith.constant 3 : index
    %c0_12 = arith.constant 0 : index
    %c0_13 = arith.constant 0 : index
    %19 = vector.load %arg2[%c3, %c0_12, %c0_13] : memref<25x16x16xbf16, #tpu.memory_space<vmem>>, vector<1x16x16xbf16>
    %20 = vector.shape_cast %19 : vector<1x16x16xbf16> to vector<16x16xbf16>
    %cst_14 = arith.constant dense<0.000000e+00> : vector<16x384xf32>
    %21 = tpu.matmul %20, %18, %cst_14 {dimension_numbers = #tpu.dot_dimension_numbers<[1], [0], [0], [1], [0, 0, 1, 1], [], []>} : vector<16x16xbf16>, vector<16x384xbf16>, vector<16x384xf32> -> vector<16x384xf32>
    %22 = arith.addf %17, %21 : vector<16x384xf32>
    %23 = vector.extract_strided_slice %1 {offsets = [0, 4], sizes = [16, 384], strides = [1, 1]} : vector<16x468xbf16> to vector<16x384xbf16>
    %c4 = arith.constant 4 : index
    %c0_15 = arith.constant 0 : index
    %c0_16 = arith.constant 0 : index
    %24 = vector.load %arg2[%c4, %c0_15, %c0_16] : memref<25x16x16xbf16, #tpu.memory_space<vmem>>, vector<1x16x16xbf16>
    %25 = vector.shape_cast %24 : vector<1x16x16xbf16> to vector<16x16xbf16>
    %cst_17 = arith.constant dense<0.000000e+00> : vector<16x384xf32>
    %26 = tpu.matmul %25, %23, %cst_17 {dimension_numbers = #tpu.dot_dimension_numbers<[1], [0], [0], [1], [0, 0, 1, 1], [], []>} : vector<16x16xbf16>, vector<16x384xbf16>, vector<16x384xf32> -> vector<16x384xf32>
    %27 = arith.addf %22, %26 : vector<16x384xf32>
    %28 = vector.extract_strided_slice %1 {offsets = [0, 20], sizes = [16, 384], strides = [1, 1]} : vector<16x468xbf16> to vector<16x384xbf16>
    %c5 = arith.constant 5 : index
    %c0_18 = arith.constant 0 : index
    %c0_19 = arith.constant 0 : index
    %29 = vector.load %arg2[%c5, %c0_18, %c0_19] : memref<25x16x16xbf16, #tpu.memory_space<vmem>>, vector<1x16x16xbf16>
    %30 = vector.shape_cast %29 : vector<1x16x16xbf16> to vector<16x16xbf16>
    %cst_20 = arith.constant dense<0.000000e+00> : vector<16x384xf32>
    %31 = tpu.matmul %30, %28, %cst_20 {dimension_numbers = #tpu.dot_dimension_numbers<[1], [0], [0], [1], [0, 0, 1, 1], [], []>} : vector<16x16xbf16>, vector<16x384xbf16>, vector<16x384xf32> -> vector<16x384xf32>
    %32 = arith.addf %27, %31 : vector<16x384xf32>
    %33 = vector.extract_strided_slice %1 {offsets = [0, 21], sizes = [16, 384], strides = [1, 1]} : vector<16x468xbf16> to vector<16x384xbf16>
    %c6 = arith.constant 6 : index
    %c0_21 = arith.constant 0 : index
    %c0_22 = arith.constant 0 : index
    %34 = vector.load %arg2[%c6, %c0_21, %c0_22] : memref<25x16x16xbf16, #tpu.memory_space<vmem>>, vector<1x16x16xbf16>
    %35 = vector.shape_cast %34 : vector<1x16x16xbf16> to vector<16x16xbf16>
    %cst_23 = arith.constant dense<0.000000e+00> : vector<16x384xf32>
    %36 = tpu.matmul %35, %33, %cst_23 {dimension_numbers = #tpu.dot_dimension_numbers<[1], [0], [0], [1], [0, 0, 1, 1], [], []>} : vector<16x16xbf16>, vector<16x384xbf16>, vector<16x384xf32> -> vector<16x384xf32>
    %37 = arith.addf %32, %36 : vector<16x384xf32>
    %38 = vector.extract_strided_slice %1 {offsets = [0, 22], sizes = [16, 384], strides = [1, 1]} : vector<16x468xbf16> to vector<16x384xbf16>
    %c7 = arith.constant 7 : index
    %c0_24 = arith.constant 0 : index
    %c0_25 = arith.constant 0 : index
    %39 = vector.load %arg2[%c7, %c0_24, %c0_25] : memref<25x16x16xbf16, #tpu.memory_space<vmem>>, vector<1x16x16xbf16>
    %40 = vector.shape_cast %39 : vector<1x16x16xbf16> to vector<16x16xbf16>
    %cst_26 = arith.constant dense<0.000000e+00> : vector<16x384xf32>
    %41 = tpu.matmul %40, %38, %cst_26 {dimension_numbers = #tpu.dot_dimension_numbers<[1], [0], [0], [1], [0, 0, 1, 1], [], []>} : vector<16x16xbf16>, vector<16x384xbf16>, vector<16x384xf32> -> vector<16x384xf32>
    %42 = arith.addf %37, %41 : vector<16x384xf32>
    %43 = vector.extract_strided_slice %1 {offsets = [0, 23], sizes = [16, 384], strides = [1, 1]} : vector<16x468xbf16> to vector<16x384xbf16>
    %c8 = arith.constant 8 : index
    %c0_27 = arith.constant 0 : index
    %c0_28 = arith.constant 0 : index
    %44 = vector.load %arg2[%c8, %c0_27, %c0_28] : memref<25x16x16xbf16, #tpu.memory_space<vmem>>, vector<1x16x16xbf16>
    %45 = vector.shape_cast %44 : vector<1x16x16xbf16> to vector<16x16xbf16>
    %cst_29 = arith.constant dense<0.000000e+00> : vector<16x384xf32>
    %46 = tpu.matmul %45, %43, %cst_29 {dimension_numbers = #tpu.dot_dimension_numbers<[1], [0], [0], [1], [0, 0, 1, 1], [], []>} : vector<16x16xbf16>, vector<16x384xbf16>, vector<16x384xf32> -> vector<16x384xf32>
    %47 = arith.addf %42, %46 : vector<16x384xf32>
    %48 = vector.extract_strided_slice %1 {offsets = [0, 24], sizes = [16, 384], strides = [1, 1]} : vector<16x468xbf16> to vector<16x384xbf16>
    %c9 = arith.constant 9 : index
    %c0_30 = arith.constant 0 : index
    %c0_31 = arith.constant 0 : index
    %49 = vector.load %arg2[%c9, %c0_30, %c0_31] : memref<25x16x16xbf16, #tpu.memory_space<vmem>>, vector<1x16x16xbf16>
    %50 = vector.shape_cast %49 : vector<1x16x16xbf16> to vector<16x16xbf16>
    %cst_32 = arith.constant dense<0.000000e+00> : vector<16x384xf32>
    %51 = tpu.matmul %50, %48, %cst_32 {dimension_numbers = #tpu.dot_dimension_numbers<[1], [0], [0], [1], [0, 0, 1, 1], [], []>} : vector<16x16xbf16>, vector<16x384xbf16>, vector<16x384xf32> -> vector<16x384xf32>
    %52 = arith.addf %47, %51 : vector<16x384xf32>
    %53 = vector.extract_strided_slice %1 {offsets = [0, 40], sizes = [16, 384], strides = [1, 1]} : vector<16x468xbf16> to vector<16x384xbf16>
    %c10 = arith.constant 10 : index
    %c0_33 = arith.constant 0 : index
    %c0_34 = arith.constant 0 : index
    %54 = vector.load %arg2[%c10, %c0_33, %c0_34] : memref<25x16x16xbf16, #tpu.memory_space<vmem>>, vector<1x16x16xbf16>
    %55 = vector.shape_cast %54 : vector<1x16x16xbf16> to vector<16x16xbf16>
    %cst_35 = arith.constant dense<0.000000e+00> : vector<16x384xf32>
    %56 = tpu.matmul %55, %53, %cst_35 {dimension_numbers = #tpu.dot_dimension_numbers<[1], [0], [0], [1], [0, 0, 1, 1], [], []>} : vector<16x16xbf16>, vector<16x384xbf16>, vector<16x384xf32> -> vector<16x384xf32>
    %57 = arith.addf %52, %56 : vector<16x384xf32>
    %58 = vector.extract_strided_slice %1 {offsets = [0, 41], sizes = [16, 384], strides = [1, 1]} : vector<16x468xbf16> to vector<16x384xbf16>
    %c11 = arith.constant 11 : index
    %c0_36 = arith.constant 0 : index
    %c0_37 = arith.constant 0 : index
    %59 = vector.load %arg2[%c11, %c0_36, %c0_37] : memref<25x16x16xbf16, #tpu.memory_space<vmem>>, vector<1x16x16xbf16>
    %60 = vector.shape_cast %59 : vector<1x16x16xbf16> to vector<16x16xbf16>
    %cst_38 = arith.constant dense<0.000000e+00> : vector<16x384xf32>
    %61 = tpu.matmul %60, %58, %cst_38 {dimension_numbers = #tpu.dot_dimension_numbers<[1], [0], [0], [1], [0, 0, 1, 1], [], []>} : vector<16x16xbf16>, vector<16x384xbf16>, vector<16x384xf32> -> vector<16x384xf32>
    %62 = arith.addf %57, %61 : vector<16x384xf32>
    %63 = vector.extract_strided_slice %1 {offsets = [0, 42], sizes = [16, 384], strides = [1, 1]} : vector<16x468xbf16> to vector<16x384xbf16>
    %c12 = arith.constant 12 : index
    %c0_39 = arith.constant 0 : index
    %c0_40 = arith.constant 0 : index
    %64 = vector.load %arg2[%c12, %c0_39, %c0_40] : memref<25x16x16xbf16, #tpu.memory_space<vmem>>, vector<1x16x16xbf16>
    %65 = vector.shape_cast %64 : vector<1x16x16xbf16> to vector<16x16xbf16>
    %cst_41 = arith.constant dense<0.000000e+00> : vector<16x384xf32>
    %66 = tpu.matmul %65, %63, %cst_41 {dimension_numbers = #tpu.dot_dimension_numbers<[1], [0], [0], [1], [0, 0, 1, 1], [], []>} : vector<16x16xbf16>, vector<16x384xbf16>, vector<16x384xf32> -> vector<16x384xf32>
    %67 = arith.addf %62, %66 : vector<16x384xf32>
    %68 = vector.extract_strided_slice %1 {offsets = [0, 43], sizes = [16, 384], strides = [1, 1]} : vector<16x468xbf16> to vector<16x384xbf16>
    %c13 = arith.constant 13 : index
    %c0_42 = arith.constant 0 : index
    %c0_43 = arith.constant 0 : index
    %69 = vector.load %arg2[%c13, %c0_42, %c0_43] : memref<25x16x16xbf16, #tpu.memory_space<vmem>>, vector<1x16x16xbf16>
    %70 = vector.shape_cast %69 : vector<1x16x16xbf16> to vector<16x16xbf16>
    %cst_44 = arith.constant dense<0.000000e+00> : vector<16x384xf32>
    %71 = tpu.matmul %70, %68, %cst_44 {dimension_numbers = #tpu.dot_dimension_numbers<[1], [0], [0], [1], [0, 0, 1, 1], [], []>} : vector<16x16xbf16>, vector<16x384xbf16>, vector<16x384xf32> -> vector<16x384xf32>
    %72 = arith.addf %67, %71 : vector<16x384xf32>
    %73 = vector.extract_strided_slice %1 {offsets = [0, 44], sizes = [16, 384], strides = [1, 1]} : vector<16x468xbf16> to vector<16x384xbf16>
    %c14 = arith.constant 14 : index
    %c0_45 = arith.constant 0 : index
    %c0_46 = arith.constant 0 : index
    %74 = vector.load %arg2[%c14, %c0_45, %c0_46] : memref<25x16x16xbf16, #tpu.memory_space<vmem>>, vector<1x16x16xbf16>
    %75 = vector.shape_cast %74 : vector<1x16x16xbf16> to vector<16x16xbf16>
    %cst_47 = arith.constant dense<0.000000e+00> : vector<16x384xf32>
    %76 = tpu.matmul %75, %73, %cst_47 {dimension_numbers = #tpu.dot_dimension_numbers<[1], [0], [0], [1], [0, 0, 1, 1], [], []>} : vector<16x16xbf16>, vector<16x384xbf16>, vector<16x384xf32> -> vector<16x384xf32>
    %77 = arith.addf %72, %76 : vector<16x384xf32>
    %78 = vector.extract_strided_slice %1 {offsets = [0, 60], sizes = [16, 384], strides = [1, 1]} : vector<16x468xbf16> to vector<16x384xbf16>
    %c15 = arith.constant 15 : index
    %c0_48 = arith.constant 0 : index
    %c0_49 = arith.constant 0 : index
    %79 = vector.load %arg2[%c15, %c0_48, %c0_49] : memref<25x16x16xbf16, #tpu.memory_space<vmem>>, vector<1x16x16xbf16>
    %80 = vector.shape_cast %79 : vector<1x16x16xbf16> to vector<16x16xbf16>
    %cst_50 = arith.constant dense<0.000000e+00> : vector<16x384xf32>
    %81 = tpu.matmul %80, %78, %cst_50 {dimension_numbers = #tpu.dot_dimension_numbers<[1], [0], [0], [1], [0, 0, 1, 1], [], []>} : vector<16x16xbf16>, vector<16x384xbf16>, vector<16x384xf32> -> vector<16x384xf32>
    %82 = arith.addf %77, %81 : vector<16x384xf32>
    %83 = vector.extract_strided_slice %1 {offsets = [0, 61], sizes = [16, 384], strides = [1, 1]} : vector<16x468xbf16> to vector<16x384xbf16>
    %c16 = arith.constant 16 : index
    %c0_51 = arith.constant 0 : index
    %c0_52 = arith.constant 0 : index
    %84 = vector.load %arg2[%c16, %c0_51, %c0_52] : memref<25x16x16xbf16, #tpu.memory_space<vmem>>, vector<1x16x16xbf16>
    %85 = vector.shape_cast %84 : vector<1x16x16xbf16> to vector<16x16xbf16>
    %cst_53 = arith.constant dense<0.000000e+00> : vector<16x384xf32>
    %86 = tpu.matmul %85, %83, %cst_53 {dimension_numbers = #tpu.dot_dimension_numbers<[1], [0], [0], [1], [0, 0, 1, 1], [], []>} : vector<16x16xbf16>, vector<16x384xbf16>, vector<16x384xf32> -> vector<16x384xf32>
    %87 = arith.addf %82, %86 : vector<16x384xf32>
    %88 = vector.extract_strided_slice %1 {offsets = [0, 62], sizes = [16, 384], strides = [1, 1]} : vector<16x468xbf16> to vector<16x384xbf16>
    %c17 = arith.constant 17 : index
    %c0_54 = arith.constant 0 : index
    %c0_55 = arith.constant 0 : index
    %89 = vector.load %arg2[%c17, %c0_54, %c0_55] : memref<25x16x16xbf16, #tpu.memory_space<vmem>>, vector<1x16x16xbf16>
    %90 = vector.shape_cast %89 : vector<1x16x16xbf16> to vector<16x16xbf16>
    %cst_56 = arith.constant dense<0.000000e+00> : vector<16x384xf32>
    %91 = tpu.matmul %90, %88, %cst_56 {dimension_numbers = #tpu.dot_dimension_numbers<[1], [0], [0], [1], [0, 0, 1, 1], [], []>} : vector<16x16xbf16>, vector<16x384xbf16>, vector<16x384xf32> -> vector<16x384xf32>
    %92 = arith.addf %87, %91 : vector<16x384xf32>
    %93 = vector.extract_strided_slice %1 {offsets = [0, 63], sizes = [16, 384], strides = [1, 1]} : vector<16x468xbf16> to vector<16x384xbf16>
    %c18 = arith.constant 18 : index
    %c0_57 = arith.constant 0 : index
    %c0_58 = arith.constant 0 : index
    %94 = vector.load %arg2[%c18, %c0_57, %c0_58] : memref<25x16x16xbf16, #tpu.memory_space<vmem>>, vector<1x16x16xbf16>
    %95 = vector.shape_cast %94 : vector<1x16x16xbf16> to vector<16x16xbf16>
    %cst_59 = arith.constant dense<0.000000e+00> : vector<16x384xf32>
    %96 = tpu.matmul %95, %93, %cst_59 {dimension_numbers = #tpu.dot_dimension_numbers<[1], [0], [0], [1], [0, 0, 1, 1], [], []>} : vector<16x16xbf16>, vector<16x384xbf16>, vector<16x384xf32> -> vector<16x384xf32>
    %97 = arith.addf %92, %96 : vector<16x384xf32>
    %98 = vector.extract_strided_slice %1 {offsets = [0, 64], sizes = [16, 384], strides = [1, 1]} : vector<16x468xbf16> to vector<16x384xbf16>
    %c19 = arith.constant 19 : index
    %c0_60 = arith.constant 0 : index
    %c0_61 = arith.constant 0 : index
    %99 = vector.load %arg2[%c19, %c0_60, %c0_61] : memref<25x16x16xbf16, #tpu.memory_space<vmem>>, vector<1x16x16xbf16>
    %100 = vector.shape_cast %99 : vector<1x16x16xbf16> to vector<16x16xbf16>
    %cst_62 = arith.constant dense<0.000000e+00> : vector<16x384xf32>
    %101 = tpu.matmul %100, %98, %cst_62 {dimension_numbers = #tpu.dot_dimension_numbers<[1], [0], [0], [1], [0, 0, 1, 1], [], []>} : vector<16x16xbf16>, vector<16x384xbf16>, vector<16x384xf32> -> vector<16x384xf32>
    %102 = arith.addf %97, %101 : vector<16x384xf32>
    %103 = vector.extract_strided_slice %1 {offsets = [0, 80], sizes = [16, 384], strides = [1, 1]} : vector<16x468xbf16> to vector<16x384xbf16>
    %c20 = arith.constant 20 : index
    %c0_63 = arith.constant 0 : index
    %c0_64 = arith.constant 0 : index
    %104 = vector.load %arg2[%c20, %c0_63, %c0_64] : memref<25x16x16xbf16, #tpu.memory_space<vmem>>, vector<1x16x16xbf16>
    %105 = vector.shape_cast %104 : vector<1x16x16xbf16> to vector<16x16xbf16>
    %cst_65 = arith.constant dense<0.000000e+00> : vector<16x384xf32>
    %106 = tpu.matmul %105, %103, %cst_65 {dimension_numbers = #tpu.dot_dimension_numbers<[1], [0], [0], [1], [0, 0, 1, 1], [], []>} : vector<16x16xbf16>, vector<16x384xbf16>, vector<16x384xf32> -> vector<16x384xf32>
    %107 = arith.addf %102, %106 : vector<16x384xf32>
    %108 = vector.extract_strided_slice %1 {offsets = [0, 81], sizes = [16, 384], strides = [1, 1]} : vector<16x468xbf16> to vector<16x384xbf16>
    %c21 = arith.constant 21 : index
    %c0_66 = arith.constant 0 : index
    %c0_67 = arith.constant 0 : index
    %109 = vector.load %arg2[%c21, %c0_66, %c0_67] : memref<25x16x16xbf16, #tpu.memory_space<vmem>>, vector<1x16x16xbf16>
    %110 = vector.shape_cast %109 : vector<1x16x16xbf16> to vector<16x16xbf16>
    %cst_68 = arith.constant dense<0.000000e+00> : vector<16x384xf32>
    %111 = tpu.matmul %110, %108, %cst_68 {dimension_numbers = #tpu.dot_dimension_numbers<[1], [0], [0], [1], [0, 0, 1, 1], [], []>} : vector<16x16xbf16>, vector<16x384xbf16>, vector<16x384xf32> -> vector<16x384xf32>
    %112 = arith.addf %107, %111 : vector<16x384xf32>
    %113 = vector.extract_strided_slice %1 {offsets = [0, 82], sizes = [16, 384], strides = [1, 1]} : vector<16x468xbf16> to vector<16x384xbf16>
    %c22 = arith.constant 22 : index
    %c0_69 = arith.constant 0 : index
    %c0_70 = arith.constant 0 : index
    %114 = vector.load %arg2[%c22, %c0_69, %c0_70] : memref<25x16x16xbf16, #tpu.memory_space<vmem>>, vector<1x16x16xbf16>
    %115 = vector.shape_cast %114 : vector<1x16x16xbf16> to vector<16x16xbf16>
    %cst_71 = arith.constant dense<0.000000e+00> : vector<16x384xf32>
    %116 = tpu.matmul %115, %113, %cst_71 {dimension_numbers = #tpu.dot_dimension_numbers<[1], [0], [0], [1], [0, 0, 1, 1], [], []>} : vector<16x16xbf16>, vector<16x384xbf16>, vector<16x384xf32> -> vector<16x384xf32>
    %117 = arith.addf %112, %116 : vector<16x384xf32>
    %118 = vector.extract_strided_slice %1 {offsets = [0, 83], sizes = [16, 384], strides = [1, 1]} : vector<16x468xbf16> to vector<16x384xbf16>
    %c23 = arith.constant 23 : index
    %c0_72 = arith.constant 0 : index
    %c0_73 = arith.constant 0 : index
    %119 = vector.load %arg2[%c23, %c0_72, %c0_73] : memref<25x16x16xbf16, #tpu.memory_space<vmem>>, vector<1x16x16xbf16>
    %120 = vector.shape_cast %119 : vector<1x16x16xbf16> to vector<16x16xbf16>
    %cst_74 = arith.constant dense<0.000000e+00> : vector<16x384xf32>
    %121 = tpu.matmul %120, %118, %cst_74 {dimension_numbers = #tpu.dot_dimension_numbers<[1], [0], [0], [1], [0, 0, 1, 1], [], []>} : vector<16x16xbf16>, vector<16x384xbf16>, vector<16x384xf32> -> vector<16x384xf32>
    %122 = arith.addf %117, %121 : vector<16x384xf32>
    %123 = vector.extract_strided_slice %1 {offsets = [0, 84], sizes = [16, 384], strides = [1, 1]} : vector<16x468xbf16> to vector<16x384xbf16>
    %c24 = arith.constant 24 : index
    %c0_75 = arith.constant 0 : index
    %c0_76 = arith.constant 0 : index
    %124 = vector.load %arg2[%c24, %c0_75, %c0_76] : memref<25x16x16xbf16, #tpu.memory_space<vmem>>, vector<1x16x16xbf16>
    %125 = vector.shape_cast %124 : vector<1x16x16xbf16> to vector<16x16xbf16>
    %cst_77 = arith.constant dense<0.000000e+00> : vector<16x384xf32>
    %126 = tpu.matmul %125, %123, %cst_77 {dimension_numbers = #tpu.dot_dimension_numbers<[1], [0], [0], [1], [0, 0, 1, 1], [], []>} : vector<16x16xbf16>, vector<16x384xbf16>, vector<16x384xf32> -> vector<16x384xf32>
    %127 = arith.addf %122, %126 : vector<16x384xf32>
    %c0_78 = arith.constant 0 : index
    %c0_79 = arith.constant 0 : index
    %128 = vector.load %arg3[%c0_78, %c0_79] : memref<16x1xf32, #tpu.memory_space<vmem>>, vector<16x1xf32>
    %129 = vector.broadcast %128 : vector<16x1xf32> to vector<16x384xf32>
    %130 = arith.addf %127, %129 : vector<16x384xf32>
    %cst_80 = arith.constant 0.000000e+00 : f32
    %131 = vector.broadcast %cst_80 : f32 to vector<16x384xf32>
    %132 = arith.maximumf %130, %131 : vector<16x384xf32>
    %c0_81 = arith.constant 0 : index
    %c0_82 = arith.constant 0 : index
    %133 = vector.load %arg4[%c0_81, %c0_82] : memref<1x384xf32, #tpu.memory_space<vmem>>, vector<1x384xf32>
    %134 = vector.broadcast %133 : vector<1x384xf32> to vector<16x384xf32>
    %135 = arith.mulf %132, %134 : vector<16x384xf32>
    %136 = arith.truncf %135 : vector<16x384xf32> to vector<16x384xbf16>
    %c0_83 = arith.constant 0 : index
    %c0_84 = arith.constant 0 : index
    %c0_85 = arith.constant 0 : index
    %137 = vector.load %arg5[%c0_83, %c0_84, %c0_85] : memref<1x16x384xbf16, #tpu.memory_space<vmem>>, vector<1x16x384xbf16>
    %138 = vector.shape_cast %137 : vector<1x16x384xbf16> to vector<16x384xbf16>
    %139 = vector.shape_cast %136 : vector<16x384xbf16> to vector<1x16x384xbf16>
    tpu.vector_store %arg5[%c0_83, %c0_84, %c0_85], %139 {strides = array<i32>} : memref<1x16x384xbf16, #tpu.memory_space<vmem>>, vector<1x16x384xbf16>,
    %cst_86 = arith.constant dense<0.000000e+00> : vector<16xf32>
    %140 = vector.multi_reduction <add>, %135, %cst_86 [1] : vector<16x384xf32> to vector<16xf32>
    %141 = vector.shape_cast %140 : vector<16xf32> to vector<16x1xf32>
    %c0_87 = arith.constant 0 : index
    %c0_88 = arith.constant 0 : index
    %c0_89 = arith.constant 0 : index
    %142 = vector.load %arg6[%c0_87, %c0_88, %c0_89] : memref<1x16x1xf32, #tpu.memory_space<vmem>>, vector<1x16x1xf32>
    %143 = vector.shape_cast %142 : vector<1x16x1xf32> to vector<16x1xf32>
    %144 = vector.shape_cast %141 : vector<16x1xf32> to vector<1x16x1xf32>
    tpu.vector_store %arg6[%c0_87, %c0_88, %c0_89], %144 {strides = array<i32>} : memref<1x16x1xf32, #tpu.memory_space<vmem>>, vector<1x16x1xf32>,
    return
  }
  func.func @transform_0(%arg0: i32) -> (i32, i32, i32) {
    %c0_i32 = arith.constant 0 : i32
    %c0_i32_0 = arith.constant 0 : i32
    %c0_i32_1 = arith.constant 0 : i32
    return %arg0, %c0_i32, %c0_i32_0 : i32, i32, i32
  }
  func.func @transform_1(%arg0: i32) -> (i32, i32, i32) {
    %c0_i32 = arith.constant 0 : i32
    %c0_i32_0 = arith.constant 0 : i32
    %c0_i32_1 = arith.constant 0 : i32
    %c0_i32_2 = arith.constant 0 : i32
    return %c0_i32, %c0_i32_0, %c0_i32_1 : i32, i32, i32
  }
  func.func @transform_2(%arg0: i32) -> (i32, i32) {
    %c0_i32 = arith.constant 0 : i32
    %c0_i32_0 = arith.constant 0 : i32
    %c0_i32_1 = arith.constant 0 : i32
    return %c0_i32, %c0_i32_0 : i32, i32
  }
  func.func @transform_3(%arg0: i32) -> (i32, i32) {
    %c0_i32 = arith.constant 0 : i32
    %c0_i32_0 = arith.constant 0 : i32
    %c0_i32_1 = arith.constant 0 : i32
    return %c0_i32, %c0_i32_0 : i32, i32
  }
  func.func @transform_4(%arg0: i32) -> (i32, i32, i32) {
    %c0_i32 = arith.constant 0 : i32
    %c0_i32_0 = arith.constant 0 : i32
    %c0_i32_1 = arith.constant 0 : i32
    return %arg0, %c0_i32, %c0_i32_0 : i32, i32, i32
  }
  func.func @transform_5(%arg0: i32) -> (i32, i32, i32) {
    %c0_i32 = arith.constant 0 : i32
    %c0_i32_0 = arith.constant 0 : i32
    %c0_i32_1 = arith.constant 0 : i32
    return %arg0, %c0_i32, %c0_i32_0 : i32, i32, i32
  }
}

module attributes {stable_mosaic.version = 11 : i64} {
  func.func @conv_bn_relu_kernel(%arg0: i32, %arg1: memref<1x16x468xbf16, #tpu.memory_space<vmem>>, %arg2: memref<9x16x16xbf16, #tpu.memory_space<vmem>>, %arg3: memref<16x1xf32, #tpu.memory_space<vmem>>, %arg4: memref<1x384xf32, #tpu.memory_space<vmem>>, %arg5: memref<1x16x384xbf16, #tpu.memory_space<vmem>>, %arg6: memref<1x16x1xf32, #tpu.memory_space<vmem>>) attributes {dimension_semantics = [#tpu.dimension_semantics<parallel>], iteration_bounds = array<i64: 2>, scalar_prefetch = 0 : i64, scratch_operands = 0 : i64, tpu.core_type = #tpu.core_type<tc>, window_params = [{transform_indices = @transform_0, window_bounds = array<i64: 1, 16, 468>}, {pipeline_mode = #tpu.pipeline_mode<synchronous>, transform_indices = @transform_1, window_bounds = array<i64: 9, 16, 16>}, {pipeline_mode = #tpu.pipeline_mode<synchronous>, transform_indices = @transform_2, window_bounds = array<i64: 16, 1>}, {pipeline_mode = #tpu.pipeline_mode<synchronous>, transform_indices = @transform_3, window_bounds = array<i64: 1, 384>}, {transform_indices = @transform_4, window_bounds = array<i64: 1, 16, 384>}, {transform_indices = @transform_5, window_bounds = array<i64: 1, 16, 1>}]} {
    %c0 = arith.constant 0 : index
    %c0_0 = arith.constant 0 : index
    %c0_1 = arith.constant 0 : index
    %0 = vector.load %arg1[%c0, %c0_0, %c0_1] : memref<1x16x468xbf16, #tpu.memory_space<vmem>>, vector<1x16x468xbf16>
    %1 = vector.shape_cast %0 : vector<1x16x468xbf16> to vector<16x468xbf16>
    %cst = arith.constant 0.000000e+00 : f32
    %2 = vector.broadcast %cst : f32 to vector<16x384xf32>
    %3 = vector.extract_strided_slice %1 {offsets = [0, 21], sizes = [16, 384], strides = [1, 1]} : vector<16x468xbf16> to vector<16x384xbf16>
    %c0_2 = arith.constant 0 : index
    %c0_3 = arith.constant 0 : index
    %c0_4 = arith.constant 0 : index
    %4 = vector.load %arg2[%c0_2, %c0_3, %c0_4] : memref<9x16x16xbf16, #tpu.memory_space<vmem>>, vector<1x16x16xbf16>
    %5 = vector.shape_cast %4 : vector<1x16x16xbf16> to vector<16x16xbf16>
    %cst_5 = arith.constant dense<0.000000e+00> : vector<16x384xf32>
    %6 = tpu.matmul %5, %3, %cst_5 {dimension_numbers = #tpu.dot_dimension_numbers<[1], [0], [0], [1], [0, 0, 1, 1], [], []>} : vector<16x16xbf16>, vector<16x384xbf16>, vector<16x384xf32> -> vector<16x384xf32>
    %7 = arith.addf %2, %6 : vector<16x384xf32>
    %8 = vector.extract_strided_slice %1 {offsets = [0, 22], sizes = [16, 384], strides = [1, 1]} : vector<16x468xbf16> to vector<16x384xbf16>
    %c1 = arith.constant 1 : index
    %c0_6 = arith.constant 0 : index
    %c0_7 = arith.constant 0 : index
    %9 = vector.load %arg2[%c1, %c0_6, %c0_7] : memref<9x16x16xbf16, #tpu.memory_space<vmem>>, vector<1x16x16xbf16>
    %10 = vector.shape_cast %9 : vector<1x16x16xbf16> to vector<16x16xbf16>
    %cst_8 = arith.constant dense<0.000000e+00> : vector<16x384xf32>
    %11 = tpu.matmul %10, %8, %cst_8 {dimension_numbers = #tpu.dot_dimension_numbers<[1], [0], [0], [1], [0, 0, 1, 1], [], []>} : vector<16x16xbf16>, vector<16x384xbf16>, vector<16x384xf32> -> vector<16x384xf32>
    %12 = arith.addf %7, %11 : vector<16x384xf32>
    %13 = vector.extract_strided_slice %1 {offsets = [0, 23], sizes = [16, 384], strides = [1, 1]} : vector<16x468xbf16> to vector<16x384xbf16>
    %c2 = arith.constant 2 : index
    %c0_9 = arith.constant 0 : index
    %c0_10 = arith.constant 0 : index
    %14 = vector.load %arg2[%c2, %c0_9, %c0_10] : memref<9x16x16xbf16, #tpu.memory_space<vmem>>, vector<1x16x16xbf16>
    %15 = vector.shape_cast %14 : vector<1x16x16xbf16> to vector<16x16xbf16>
    %cst_11 = arith.constant dense<0.000000e+00> : vector<16x384xf32>
    %16 = tpu.matmul %15, %13, %cst_11 {dimension_numbers = #tpu.dot_dimension_numbers<[1], [0], [0], [1], [0, 0, 1, 1], [], []>} : vector<16x16xbf16>, vector<16x384xbf16>, vector<16x384xf32> -> vector<16x384xf32>
    %17 = arith.addf %12, %16 : vector<16x384xf32>
    %18 = vector.extract_strided_slice %1 {offsets = [0, 41], sizes = [16, 384], strides = [1, 1]} : vector<16x468xbf16> to vector<16x384xbf16>
    %c3 = arith.constant 3 : index
    %c0_12 = arith.constant 0 : index
    %c0_13 = arith.constant 0 : index
    %19 = vector.load %arg2[%c3, %c0_12, %c0_13] : memref<9x16x16xbf16, #tpu.memory_space<vmem>>, vector<1x16x16xbf16>
    %20 = vector.shape_cast %19 : vector<1x16x16xbf16> to vector<16x16xbf16>
    %cst_14 = arith.constant dense<0.000000e+00> : vector<16x384xf32>
    %21 = tpu.matmul %20, %18, %cst_14 {dimension_numbers = #tpu.dot_dimension_numbers<[1], [0], [0], [1], [0, 0, 1, 1], [], []>} : vector<16x16xbf16>, vector<16x384xbf16>, vector<16x384xf32> -> vector<16x384xf32>
    %22 = arith.addf %17, %21 : vector<16x384xf32>
    %23 = vector.extract_strided_slice %1 {offsets = [0, 42], sizes = [16, 384], strides = [1, 1]} : vector<16x468xbf16> to vector<16x384xbf16>
    %c4 = arith.constant 4 : index
    %c0_15 = arith.constant 0 : index
    %c0_16 = arith.constant 0 : index
    %24 = vector.load %arg2[%c4, %c0_15, %c0_16] : memref<9x16x16xbf16, #tpu.memory_space<vmem>>, vector<1x16x16xbf16>
    %25 = vector.shape_cast %24 : vector<1x16x16xbf16> to vector<16x16xbf16>
    %cst_17 = arith.constant dense<0.000000e+00> : vector<16x384xf32>
    %26 = tpu.matmul %25, %23, %cst_17 {dimension_numbers = #tpu.dot_dimension_numbers<[1], [0], [0], [1], [0, 0, 1, 1], [], []>} : vector<16x16xbf16>, vector<16x384xbf16>, vector<16x384xf32> -> vector<16x384xf32>
    %27 = arith.addf %22, %26 : vector<16x384xf32>
    %28 = vector.extract_strided_slice %1 {offsets = [0, 43], sizes = [16, 384], strides = [1, 1]} : vector<16x468xbf16> to vector<16x384xbf16>
    %c5 = arith.constant 5 : index
    %c0_18 = arith.constant 0 : index
    %c0_19 = arith.constant 0 : index
    %29 = vector.load %arg2[%c5, %c0_18, %c0_19] : memref<9x16x16xbf16, #tpu.memory_space<vmem>>, vector<1x16x16xbf16>
    %30 = vector.shape_cast %29 : vector<1x16x16xbf16> to vector<16x16xbf16>
    %cst_20 = arith.constant dense<0.000000e+00> : vector<16x384xf32>
    %31 = tpu.matmul %30, %28, %cst_20 {dimension_numbers = #tpu.dot_dimension_numbers<[1], [0], [0], [1], [0, 0, 1, 1], [], []>} : vector<16x16xbf16>, vector<16x384xbf16>, vector<16x384xf32> -> vector<16x384xf32>
    %32 = arith.addf %27, %31 : vector<16x384xf32>
    %33 = vector.extract_strided_slice %1 {offsets = [0, 61], sizes = [16, 384], strides = [1, 1]} : vector<16x468xbf16> to vector<16x384xbf16>
    %c6 = arith.constant 6 : index
    %c0_21 = arith.constant 0 : index
    %c0_22 = arith.constant 0 : index
    %34 = vector.load %arg2[%c6, %c0_21, %c0_22] : memref<9x16x16xbf16, #tpu.memory_space<vmem>>, vector<1x16x16xbf16>
    %35 = vector.shape_cast %34 : vector<1x16x16xbf16> to vector<16x16xbf16>
    %cst_23 = arith.constant dense<0.000000e+00> : vector<16x384xf32>
    %36 = tpu.matmul %35, %33, %cst_23 {dimension_numbers = #tpu.dot_dimension_numbers<[1], [0], [0], [1], [0, 0, 1, 1], [], []>} : vector<16x16xbf16>, vector<16x384xbf16>, vector<16x384xf32> -> vector<16x384xf32>
    %37 = arith.addf %32, %36 : vector<16x384xf32>
    %38 = vector.extract_strided_slice %1 {offsets = [0, 62], sizes = [16, 384], strides = [1, 1]} : vector<16x468xbf16> to vector<16x384xbf16>
    %c7 = arith.constant 7 : index
    %c0_24 = arith.constant 0 : index
    %c0_25 = arith.constant 0 : index
    %39 = vector.load %arg2[%c7, %c0_24, %c0_25] : memref<9x16x16xbf16, #tpu.memory_space<vmem>>, vector<1x16x16xbf16>
    %40 = vector.shape_cast %39 : vector<1x16x16xbf16> to vector<16x16xbf16>
    %cst_26 = arith.constant dense<0.000000e+00> : vector<16x384xf32>
    %41 = tpu.matmul %40, %38, %cst_26 {dimension_numbers = #tpu.dot_dimension_numbers<[1], [0], [0], [1], [0, 0, 1, 1], [], []>} : vector<16x16xbf16>, vector<16x384xbf16>, vector<16x384xf32> -> vector<16x384xf32>
    %42 = arith.addf %37, %41 : vector<16x384xf32>
    %43 = vector.extract_strided_slice %1 {offsets = [0, 63], sizes = [16, 384], strides = [1, 1]} : vector<16x468xbf16> to vector<16x384xbf16>
    %c8 = arith.constant 8 : index
    %c0_27 = arith.constant 0 : index
    %c0_28 = arith.constant 0 : index
    %44 = vector.load %arg2[%c8, %c0_27, %c0_28] : memref<9x16x16xbf16, #tpu.memory_space<vmem>>, vector<1x16x16xbf16>
    %45 = vector.shape_cast %44 : vector<1x16x16xbf16> to vector<16x16xbf16>
    %cst_29 = arith.constant dense<0.000000e+00> : vector<16x384xf32>
    %46 = tpu.matmul %45, %43, %cst_29 {dimension_numbers = #tpu.dot_dimension_numbers<[1], [0], [0], [1], [0, 0, 1, 1], [], []>} : vector<16x16xbf16>, vector<16x384xbf16>, vector<16x384xf32> -> vector<16x384xf32>
    %47 = arith.addf %42, %46 : vector<16x384xf32>
    %c0_30 = arith.constant 0 : index
    %c0_31 = arith.constant 0 : index
    %48 = vector.load %arg3[%c0_30, %c0_31] : memref<16x1xf32, #tpu.memory_space<vmem>>, vector<16x1xf32>
    %49 = vector.broadcast %48 : vector<16x1xf32> to vector<16x384xf32>
    %50 = arith.addf %47, %49 : vector<16x384xf32>
    %cst_32 = arith.constant 0.000000e+00 : f32
    %51 = vector.broadcast %cst_32 : f32 to vector<16x384xf32>
    %52 = arith.maximumf %50, %51 : vector<16x384xf32>
    %c0_33 = arith.constant 0 : index
    %c0_34 = arith.constant 0 : index
    %53 = vector.load %arg4[%c0_33, %c0_34] : memref<1x384xf32, #tpu.memory_space<vmem>>, vector<1x384xf32>
    %54 = vector.broadcast %53 : vector<1x384xf32> to vector<16x384xf32>
    %55 = arith.mulf %52, %54 : vector<16x384xf32>
    %56 = arith.truncf %55 : vector<16x384xf32> to vector<16x384xbf16>
    %c0_35 = arith.constant 0 : index
    %c0_36 = arith.constant 0 : index
    %c0_37 = arith.constant 0 : index
    %57 = vector.load %arg5[%c0_35, %c0_36, %c0_37] : memref<1x16x384xbf16, #tpu.memory_space<vmem>>, vector<1x16x384xbf16>
    %58 = vector.shape_cast %57 : vector<1x16x384xbf16> to vector<16x384xbf16>
    %59 = vector.shape_cast %56 : vector<16x384xbf16> to vector<1x16x384xbf16>
    tpu.vector_store %arg5[%c0_35, %c0_36, %c0_37], %59 {strides = array<i32>} : memref<1x16x384xbf16, #tpu.memory_space<vmem>>, vector<1x16x384xbf16>,
    %cst_38 = arith.constant dense<0.000000e+00> : vector<16xf32>
    %60 = vector.multi_reduction <add>, %55, %cst_38 [1] : vector<16x384xf32> to vector<16xf32>
    %61 = vector.shape_cast %60 : vector<16xf32> to vector<16x1xf32>
    %c0_39 = arith.constant 0 : index
    %c0_40 = arith.constant 0 : index
    %c0_41 = arith.constant 0 : index
    %62 = vector.load %arg6[%c0_39, %c0_40, %c0_41] : memref<1x16x1xf32, #tpu.memory_space<vmem>>, vector<1x16x1xf32>
    %63 = vector.shape_cast %62 : vector<1x16x1xf32> to vector<16x1xf32>
    %64 = vector.shape_cast %61 : vector<16x1xf32> to vector<1x16x1xf32>
    tpu.vector_store %arg6[%c0_39, %c0_40, %c0_41], %64 {strides = array<i32>} : memref<1x16x1xf32, #tpu.memory_space<vmem>>, vector<1x16x1xf32>,
    return
  }
  func.func @transform_0(%arg0: i32) -> (i32, i32, i32) {
    %c0_i32 = arith.constant 0 : i32
    %c0_i32_0 = arith.constant 0 : i32
    %c0_i32_1 = arith.constant 0 : i32
    return %arg0, %c0_i32, %c0_i32_0 : i32, i32, i32
  }
  func.func @transform_1(%arg0: i32) -> (i32, i32, i32) {
    %c0_i32 = arith.constant 0 : i32
    %c0_i32_0 = arith.constant 0 : i32
    %c0_i32_1 = arith.constant 0 : i32
    %c0_i32_2 = arith.constant 0 : i32
    return %c0_i32, %c0_i32_0, %c0_i32_1 : i32, i32, i32
  }
  func.func @transform_2(%arg0: i32) -> (i32, i32) {
    %c0_i32 = arith.constant 0 : i32
    %c0_i32_0 = arith.constant 0 : i32
    %c0_i32_1 = arith.constant 0 : i32
    return %c0_i32, %c0_i32_0 : i32, i32
  }
  func.func @transform_3(%arg0: i32) -> (i32, i32) {
    %c0_i32 = arith.constant 0 : i32
    %c0_i32_0 = arith.constant 0 : i32
    %c0_i32_1 = arith.constant 0 : i32
    return %c0_i32, %c0_i32_0 : i32, i32
  }
  func.func @transform_4(%arg0: i32) -> (i32, i32, i32) {
    %c0_i32 = arith.constant 0 : i32
    %c0_i32_0 = arith.constant 0 : i32
    %c0_i32_1 = arith.constant 0 : i32
    return %arg0, %c0_i32, %c0_i32_0 : i32, i32, i32
  }
  func.func @transform_5(%arg0: i32) -> (i32, i32, i32) {
    %c0_i32 = arith.constant 0 : i32
    %c0_i32_0 = arith.constant 0 : i32
    %c0_i32_1 = arith.constant 0 : i32
    return %arg0, %c0_i32, %c0_i32_0 : i32, i32, i32
  }
}

module attributes {stable_mosaic.version = 11 : i64} {
  func.func @weighted_sum_kernel(%arg0: i32, %arg1: i32, %arg2: memref<2x1x16x1xf32, #tpu.memory_space<vmem>>, %arg3: memref<1x16x384xbf16, #tpu.memory_space<vmem>>, %arg4: memref<1x16x384xbf16, #tpu.memory_space<vmem>>, %arg5: memref<1x16x384xf32, #tpu.memory_space<vmem>>) attributes {dimension_semantics = [#tpu.dimension_semantics<parallel>, #tpu.dimension_semantics<parallel>], iteration_bounds = array<i64: 2, 1>, scalar_prefetch = 0 : i64, scratch_operands = 0 : i64, tpu.core_type = #tpu.core_type<tc>, window_params = [{transform_indices = @transform_0, window_bounds = array<i64: 2, 1, 16, 1>}, {transform_indices = @transform_1, window_bounds = array<i64: 1, 16, 384>}, {transform_indices = @transform_2, window_bounds = array<i64: 1, 16, 384>}, {transform_indices = @transform_3, window_bounds = array<i64: 1, 16, 384>}]} {
    %cst = arith.constant 0.000000e+00 : f32
    %0 = vector.broadcast %cst : f32 to vector<16x384xf32>
    %c0 = arith.constant 0 : index
    %c0_0 = arith.constant 0 : index
    %c0_1 = arith.constant 0 : index
    %1 = vector.load %arg3[%c0, %c0_0, %c0_1] : memref<1x16x384xbf16, #tpu.memory_space<vmem>>, vector<1x16x384xbf16>
    %2 = vector.shape_cast %1 : vector<1x16x384xbf16> to vector<16x384xbf16>
    %3 = arith.extf %2 : vector<16x384xbf16> to vector<16x384xf32>
    %c0_2 = arith.constant 0 : index
    %c0_3 = arith.constant 0 : index
    %c0_4 = arith.constant 0 : index
    %c0_5 = arith.constant 0 : index
    %4 = vector.load %arg2[%c0_2, %c0_3, %c0_4, %c0_5] : memref<2x1x16x1xf32, #tpu.memory_space<vmem>>, vector<1x1x16x1xf32>
    %5 = vector.shape_cast %4 : vector<1x1x16x1xf32> to vector<1x16x1xf32>
    %6 = vector.shape_cast %5 : vector<1x16x1xf32> to vector<16x1xf32>
    %7 = vector.broadcast %6 : vector<16x1xf32> to vector<16x384xf32>
    %8 = arith.mulf %3, %7 : vector<16x384xf32>
    %9 = arith.addf %0, %8 : vector<16x384xf32>
    %c0_6 = arith.constant 0 : index
    %c0_7 = arith.constant 0 : index
    %c0_8 = arith.constant 0 : index
    %10 = vector.load %arg4[%c0_6, %c0_7, %c0_8] : memref<1x16x384xbf16, #tpu.memory_space<vmem>>, vector<1x16x384xbf16>
    %11 = vector.shape_cast %10 : vector<1x16x384xbf16> to vector<16x384xbf16>
    %12 = arith.extf %11 : vector<16x384xbf16> to vector<16x384xf32>
    %c1 = arith.constant 1 : index
    %c0_9 = arith.constant 0 : index
    %c0_10 = arith.constant 0 : index
    %c0_11 = arith.constant 0 : index
    %13 = vector.load %arg2[%c1, %c0_9, %c0_10, %c0_11] : memref<2x1x16x1xf32, #tpu.memory_space<vmem>>, vector<1x1x16x1xf32>
    %14 = vector.shape_cast %13 : vector<1x1x16x1xf32> to vector<1x16x1xf32>
    %15 = vector.shape_cast %14 : vector<1x16x1xf32> to vector<16x1xf32>
    %16 = vector.broadcast %15 : vector<16x1xf32> to vector<16x384xf32>
    %17 = arith.mulf %12, %16 : vector<16x384xf32>
    %18 = arith.addf %9, %17 : vector<16x384xf32>
    %c0_12 = arith.constant 0 : index
    %c0_13 = arith.constant 0 : index
    %c0_14 = arith.constant 0 : index
    %19 = vector.load %arg5[%c0_12, %c0_13, %c0_14] : memref<1x16x384xf32, #tpu.memory_space<vmem>>, vector<1x16x384xf32>
    %20 = vector.shape_cast %19 : vector<1x16x384xf32> to vector<16x384xf32>
    %21 = vector.shape_cast %18 : vector<16x384xf32> to vector<1x16x384xf32>
    tpu.vector_store %arg5[%c0_12, %c0_13, %c0_14], %21 {strides = array<i32>} : memref<1x16x384xf32, #tpu.memory_space<vmem>>, vector<1x16x384xf32>,
    return
  }
  func.func @transform_0(%arg0: i32, %arg1: i32) -> (i32, i32, i32, i32) {
    %c0_i32 = arith.constant 0 : i32
    %c0_i32_0 = arith.constant 0 : i32
    %c0_i32_1 = arith.constant 0 : i32
    %c0_i32_2 = arith.constant 0 : i32
    return %c0_i32, %arg0, %c0_i32_0, %c0_i32_1 : i32, i32, i32, i32
  }
  func.func @transform_1(%arg0: i32, %arg1: i32) -> (i32, i32, i32) {
    %c0_i32 = arith.constant 0 : i32
    %c0_i32_0 = arith.constant 0 : i32
    return %arg0, %c0_i32, %arg1 : i32, i32, i32
  }
  func.func @transform_2(%arg0: i32, %arg1: i32) -> (i32, i32, i32) {
    %c0_i32 = arith.constant 0 : i32
    %c0_i32_0 = arith.constant 0 : i32
    return %arg0, %c0_i32, %arg1 : i32, i32, i32
  }
  func.func @transform_3(%arg0: i32, %arg1: i32) -> (i32, i32, i32) {
    %c0_i32 = arith.constant 0 : i32
    %c0_i32_0 = arith.constant 0 : i32
    return %arg0, %c0_i32, %arg1 : i32, i32, i32
  }
}

</mosaic_0001>

<bundles_post_ra>
// kernel: sk_conv_forward.3
= control target key start
LH: loop header
LB: loop body
LE: loop exit
PB: predicated region body
PF: predicated region fallthrough
CT: control target
= control target key end

     0   :  { %s1722_s18 = smov 0   ;;  %s1872_s0 = inlined_call_operand.vmem [shape: bf16[2,16,468], index: 0, kind: input, shape index: {}]   ;;  %s1873_s1 = inlined_call_operand.vmem [shape: bf16[9,16,16], index: 1, kind: input, shape index: {}]   ;;  %s1874_s2 = inlined_call_operand.vmem [shape: f32[16,1], index: 2, kind: input, shape index: {}]   ;;  %s1875_s3 = inlined_call_operand.vmem [shape: f32[1,384], index: 3, kind: input, shape index: {}]   ;;  %s1876_s4 = inlined_call_operand.vmem [shape: bf16[2,16,384], index: 4, kind: output, shape index: {0}]   ;;  %s1877_s5 = inlined_call_operand.vmem [shape: f32[2,16,1], index: 5, kind: output, shape index: {1}]  }
   0x1 LB: > { %s1461_s19 = sadd.s32 4294967295, %s1678_s18   ;;  %p1465_p0 = scmp.ge.s32.totalorder %s1678_s18, 1  ;;  %s1678_s18 = sphi %s1722_s18, %s16_s18  }
   0x2   : > { %p190_p1 = scmp.lt.s32.totalorder %s1678_s18, 3 }
   0x4   : > { %p191_p2 = pnand %p1465_p0, %p190_p1 }
   0x5   : > { %p223_p3 = scmp.lt.s32.totalorder (!%p191_p2), %s1461_s19, 1  ;;  %v1680_v0 = vmov (!%p191_p2), 0   ;;  %s1681_s24 = smov (!%p191_p2), 106   ;;  %v1682_v4 = vmov (!%p191_p2), 0.0   ;;  %vm1684_vm0 = vmmov (!%p191_p2), 0   ;;  %v1291_v6 = vld [vmem:[%s1874_s2] sm:$0xff] (!%p191_p2) }
   0x6   : > { %194 = sbr.rel (%p191_p2) target bundleno = 605 (0x25d), region = 36  ;;  %320 = vmatprep.mubr.bf16.mxu0 (!%p191_p2), %v1680_v0  ;;  %1655 = vset.pattern.permute.xlu0 (!%p191_p2), %v1680_v0  ;;  %s1683_s25 = smov (!%p191_p2), 107   ;;  %v1292_v7 = vld [vmem:[%s1874_s2 + $0x8] sm:$0xff] (!%p191_p2)  ;;  %vm277_vm1 = vcmask (!%p191_p2), 867328   ;;  %vm385_vm2 = vcmask (!%p191_p2), 875520   ;;  %vm284_vm3 = vcmask (!%p191_p2), 130048  }
   0x7   : > { %1656 = vset.pattern.permute.xlu1 (!%p191_p2), %v1680_v0  ;;  %1548 = vmatprep.subr.bf16.mxu1 (!%p191_p2), %v1682_v4  ;;  %s1685_s26 = smov (!%p191_p2), 105   ;;  %s1686_s27 = smov (!%p191_p2), 87   ;;  %v1663_v14 = vld [vmem:[%s1873_s1 + $0x8] sm:$0xff] (!%p191_p2)   ;;  %vm495_vm4 = vcmask (!%p191_p2), 859136   ;;  %v1664_v25 = vld [vmem:[%s1873_s1] sm:$0xff] (!%p191_p2)   ;;  %vm611_vm5 = vcmask (!%p191_p2), 711680  }
   0x8   : > { %1550 = vmatprep.mubr.msk.bf16.mxu1 (!%p191_p2), %vm1684_vm0, %v1682_v4  ;;  %s1687_s28 = smov (!%p191_p2), 86   ;;  %s1688_s29 = smov (!%p191_p2), 85   ;;  %vm727_vm6 = vcmask (!%p191_p2), 703488   ;;  %v1665_v35 = vld [vmem:[%s1873_s1 + $0x10] sm:$0xff] (!%p191_p2)   ;;  %v1666_v46 = vld [vmem:[%s1873_s1 + $0x18] sm:$0xff] (!%p191_p2)   ;;  %vm843_vm7 = vcmask (!%p191_p2), 695296  }
   0x9   : > { %s1689_s30 = smov (!%p191_p2), 67   ;;  %s1690_s6 = smov (!%p191_p2), 66   ;;  %v1667_v54 = vld [vmem:[%s1873_s1 + $0x20] sm:$0xff] (!%p191_p2)   ;;  %vm959_vm8 = vcmask (!%p191_p2), 547840   ;;  %v1668_v61 = vld [vmem:[%s1873_s1 + $0x28] sm:$0xff] (!%p191_p2)   ;;  %vm1075_vm9 = vcmask (!%p191_p2), 539648  }
   0xa   : > { %s1691_s7 = smov (!%p191_p2), 65   ;;  %vm1191_vm10 = vcmask (!%p191_p2), 531456   ;;  %vm1370_vm11 = vcmask (!%p191_p2), 7168  }
   0xd   : > { %s1879_s19 = smov (!%p223_p3, %s1461_s19), 1 }
   0xe   : > { %s1524_s20 = sshll.u32 %s1879_s19, 5  ;;  %s1634_s9 = smul.u32 24, %s1879_s19 }
   0xf   : > { %s227_s23 = scalar_lea.vmem %s1872_s0, %s1524_s20  ;;  %s1525_s13 = sshll.u32 %s1879_s19, 4 }
  0x10   : > { %v1657_v1 = vld [vmem:[%s227_s23 + $0x4] ss:$16 sps:$4 sm:$0xff]   ;;  %v1659_v2 = vld [vmem:[%s227_s23] ss:$16 sps:$4 sm:$0xff]   ;;  %v1660_v3 = vld [vmem:[%s227_s23 + $0x8] ss:$16 sps:$4 sm:$0xff]   ;;  %s1859_s12 = scalar_lea.vmem %s1876_s4, %s1634_s9  ;;  %s237_s16 = scalar_lea.vmem %s1877_s5, %s1525_s13 }
  0x11   : > { %271 = vrot.lane.b32.xlu0 %v1657_v1, %s1681_s24  ;;  %269 = vrot.lane.b32.xlu1 %v1659_v2, %s1681_s24  ;;  %v1662_v5 = vld [vmem:[%s227_s23 + $0xc] ss:$16 sps:$4 sm:$0xff]  }
  0x15   : > { %273 = vrot.lane.b32.xlu0 %v1660_v3, %s1681_s24  ;;  %379 = vrot.lane.b32.xlu1 %v1657_v1, %s1683_s25 }
  0x19   : > { %381 = vrot.lane.b32.xlu0 %v1660_v3, %s1683_s25  ;;  %377 = vrot.lane.b32.xlu1 %v1659_v2, %s1683_s25 }
  0x1d   : > { %489 = vrot.lane.b32.xlu0 %v1657_v1, %s1685_s26  ;;  %491 = vrot.lane.b32.xlu1 %v1660_v3, %s1685_s26 }
  0x21   : > { %487 = vrot.lane.b32.xlu0 %v1659_v2, %s1685_s26  ;;  %275 = vrot.lane.b32.xlu1 %v1662_v5, %s1681_s24 }
  0x25   : > { %605 = vrot.lane.b32.xlu0 %v1657_v1, %s1686_s27  ;;  %607 = vrot.lane.b32.xlu1 %v1660_v3, %s1686_s27 }
  0x29   : > { %603 = vrot.lane.b32.xlu0 %v1659_v2, %s1686_s27  ;;  %383 = vrot.lane.b32.xlu1 %v1662_v5, %s1683_s25 }
  0x2d   : > { %721 = vrot.lane.b32.xlu0 %v1657_v1, %s1687_s28  ;;  %723 = vrot.lane.b32.xlu1 %v1660_v3, %s1687_s28 }
  0x31   : > { %719 = vrot.lane.b32.xlu0 %v1659_v2, %s1687_s28  ;;  %493 = vrot.lane.b32.xlu1 %v1662_v5, %s1685_s26 }
  0x35   : > { %609 = vrot.lane.b32.xlu0 %v1662_v5, %s1686_s27  ;;  %837 = vrot.lane.b32.xlu1 %v1657_v1, %s1688_s29 }
  0x39   : > { %839 = vrot.lane.b32.xlu0 %v1660_v3, %s1688_s29  ;;  %835 = vrot.lane.b32.xlu1 %v1659_v2, %s1688_s29 }
  0x3d   : > { %725 = vrot.lane.b32.xlu0 %v1662_v5, %s1687_s28  ;;  %953 = vrot.lane.b32.xlu1 %v1657_v1, %s1689_s30 }
  0x41   : > { %955 = vrot.lane.b32.xlu0 %v1660_v3, %s1689_s30  ;;  %951 = vrot.lane.b32.xlu1 %v1659_v2, %s1689_s30 }
  0x45   : > { %841 = vrot.lane.b32.xlu0 %v1662_v5, %s1688_s29  ;;  %957 = vrot.lane.b32.xlu1 %v1662_v5, %s1689_s30 }
  0x49   : > { %1069 = vrot.lane.b32.xlu0 %v1657_v1, %s1690_s6  ;;  %1071 = vrot.lane.b32.xlu1 %v1660_v3, %s1690_s6 }
  0x4d   : > { %1067 = vrot.lane.b32.xlu0 %v1659_v2, %s1690_s6  ;;  %1073 = vrot.lane.b32.xlu1 %v1662_v5, %s1690_s6 }
  0x51   : > { %1185 = vrot.lane.b32.xlu0 %v1657_v1, %s1691_s7  ;;  %1187 = vrot.lane.b32.xlu1 %v1660_v3, %s1691_s7  ;;  %v1669_v1 = vld [vmem:[%s1873_s1 + $0x30] sm:$0xff]  }
  0x55   : > { %1183 = vrot.lane.b32.xlu0 %v1659_v2, %s1691_s7  ;;  %1189 = vrot.lane.b32.xlu1 %v1662_v5, %s1691_s7 }
  0x59   : > { %1295 = vperm.xlu0 %1655, %v1291_v6   ;;  %1300 = vperm.xlu1 %1656, %v1292_v7  }
  0x83   : > { %v272_v8 = vpop.permute.xlu0 %271  ;;  %v270_v9 = vpop.permute.xlu1 %269 }
  0x84   : > { %v278_v13 = vsel %vm277_vm1, %v270_v9, %v272_v8  ;;  %v1670_v9 = vld [vmem:[%s1873_s1 + $0x38] sm:$0xff]  }
  0x87   : > { %v274_v10 = vpop.permute.xlu0 %273  ;;  %v380_v11 = vpop.permute.xlu1 %379 }
  0x88   : > { %v279_v12 = vsel %vm277_vm1, %v272_v8, %v274_v10 }
  0x89   : > { %288 = vmatprep.subr.bf16.mxu0 %v279_v12 }
  0x8a   : > { %289 = vmatpush1.bf16.msra.mxu0 %v278_v13 }
  0x8b   : > { %v382_v15 = vpop.permute.xlu0 %381  ;;  %v378_v16 = vpop.permute.xlu1 %377 }
  0x8c   : > { %v387_v17 = vsel %vm385_vm2, %v380_v11, %v382_v15  ;;  %v386_v18 = vsel %vm385_vm2, %v378_v16, %v380_v11 }
  0x8d   : > { %1478 = vmatmul.mubr.msk.bf16.vlgmr.msra.gmra.mrb[0].mxu0 %vm284_vm3, %v1663_v14  ;;  %395 = vmatprep.subr.bf16.mxu0 %v387_v17 }
  0x8e   : > { %396 = vmatpush1.bf16.msra.mxu0 %v386_v18  ;;  %427 = vmatprep.mubr.bf16.mxu0 %v1680_v0 }
  0x8f   : > { %v490_v19 = vpop.permute.xlu0 %489  ;;  %v492_v20 = vpop.permute.xlu1 %491 }
  0x90   : > { %v497_v21 = vsel %vm495_vm4, %v490_v19, %v492_v20 }
  0x91   : > { %505 = vmatprep.subr.bf16.mxu0 %v497_v21 }
  0x93   : > { %v488_v22 = vpop.permute.xlu0 %487  ;;  %v276_v23 = vpop.permute.xlu1 %275 }
  0x94   : > { %v280_v24 = vsel %vm277_vm1, %v274_v10, %v276_v23  ;;  %v496_v26 = vsel %vm495_vm4, %v488_v22, %v490_v19 }
  0x95   : > { %1549 = vmatpush3.bf16.msra.mxu1 %v280_v24 }
  0x96   : > { %1554 = vmatprep.subr.bf16.mxu1 %v1682_v4 }
  0x97   : > { %v606_v27 = vpop.permute.xlu0 %605  ;;  %v608_v28 = vpop.permute.xlu1 %607 }
  0x98   : > { %1551 = vmatmul.mubr.msk.bf16.vlgmr.msra.gmra.mrb[0].mxu1 %vm284_vm3, %v1663_v14  ;;  %v613_v29 = vsel %vm611_vm5, %v606_v27, %v608_v28 }
  0x99   : > { %1481 = vmatmul.mubr.msk.bf16.vlgmr.msra.gmra.mrb[0].mxu0 %vm284_vm3, %v1664_v25  ;;  %1556 = vmatprep.mubr.msk.bf16.mxu1 %vm1684_vm0, %v1682_v4 }
  0x9a   : > { %506 = vmatpush1.bf16.msra.mxu0 %v496_v26  ;;  %537 = vmatprep.mubr.bf16.mxu0 %v1680_v0 }
  0x9b   : > { %v604_v30 = vpop.permute.xlu0 %603  ;;  %621 = vmatprep.subr.bf16.mxu0 %v613_v29  ;;  %v384_v31 = vpop.permute.xlu1 %383 }
  0x9c   : > { %v388_v32 = vsel %vm385_vm2, %v382_v15, %v384_v31  ;;  %v612_v36 = vsel %vm611_vm5, %v604_v30, %v606_v27  ;;  %v1671_v15 = vld [vmem:[%s1873_s1 + $0x40] sm:$0xff]  }
  0x9d   : > { %1555 = vmatpush3.bf16.msra.mxu1 %v388_v32 }
  0x9e   : > { %1560 = vmatprep.subr.bf16.mxu1 %v1682_v4 }
  0x9f   : > { %v722_v33 = vpop.permute.xlu0 %721  ;;  %v724_v34 = vpop.permute.xlu1 %723 }
  0xa0   : > { %1557 = vmatmul.mubr.msk.bf16.vlgmr.msra.gmra.mrb[4].mxu1 %vm284_vm3, %v1664_v25  ;;  %v729_v39 = vsel %vm727_vm6, %v722_v33, %v724_v34 }
  0xa1   : > { %1562 = vmatprep.mubr.msk.bf16.mxu1 %vm1684_vm0, %v1682_v4 }
  0xa3   : > { %v720_v37 = vpop.permute.xlu0 %719  ;;  %v494_v38 = vpop.permute.xlu1 %493 }
  0xa4   : > { %v498_v40 = vsel %vm495_vm4, %v492_v20, %v494_v38  ;;  %v728_v47 = vsel %vm727_vm6, %v720_v37, %v722_v33 }
  0xa5   : > { %1486 = vmatmul.mubr.msk.bf16.vlgmr.msra.gmra.mrb[0].mxu0 %vm284_vm3, %v1665_v35  ;;  %1561 = vmatpush3.bf16.msra.mxu1 %v498_v40 }
  0xa6   : > { %622 = vmatpush1.bf16.msra.mxu0 %v612_v36  ;;  %1566 = vmatprep.subr.bf16.mxu1 %v1682_v4 }
  0xa7   : > { %v610_v41 = vpop.permute.xlu0 %609  ;;  %737 = vmatprep.subr.bf16.mxu0 %v729_v39  ;;  %653 = vmatprep.mubr.bf16.mxu0 %v1680_v0  ;;  %v838_v43 = vpop.permute.xlu1 %837 }
  0xa8   : > { %v614_v42 = vsel %vm611_vm5, %v608_v28, %v610_v41  ;;  %1563 = vmatmul.mubr.msk.bf16.vlgmr.msra.gmra.mrb[8].mxu1 %vm284_vm3, %v1665_v35 }
  0xa9   : > { %1567 = vmatpush3.bf16.msra.mxu1 %v614_v42  ;;  %1568 = vmatprep.mubr.msk.bf16.mxu1 %vm1684_vm0, %v1682_v4 }
  0xaa   : > { %1572 = vmatprep.subr.bf16.mxu1 %v1682_v4 }
  0xab   : > { %v840_v44 = vpop.permute.xlu0 %839  ;;  %v836_v45 = vpop.permute.xlu1 %835 }
  0xac   : > { %v845_v50 = vsel %vm843_vm7, %v838_v43, %v840_v44  ;;  %v844_v58 = vsel %vm843_vm7, %v836_v45, %v838_v43 }
  0xaf   : > { %v726_v48 = vpop.permute.xlu0 %725  ;;  %v954_v51 = vpop.permute.xlu1 %953 }
  0xb0   : > { %v730_v49 = vsel %vm727_vm6, %v724_v34, %v726_v48  ;;  %1569 = vmatmul.mubr.msk.bf16.vlgmr.msra.gmra.mrb[12].mxu1 %vm284_vm3, %v1666_v46 }
  0xb1   : > { %1491 = vmatmul.mubr.msk.bf16.vlgmr.msra.gmra.mrb[0].mxu0 %vm284_vm3, %v1666_v46  ;;  %1573 = vmatpush3.bf16.msra.mxu1 %v730_v49 }
  0xb2   : > { %738 = vmatpush1.bf16.msra.mxu0 %v728_v47  ;;  %1574 = vmatprep.mubr.msk.bf16.mxu1 %vm1684_vm0, %v1682_v4 }
  0xb3   : > { %v956_v52 = vpop.permute.xlu0 %955  ;;  %853 = vmatprep.subr.bf16.mxu0 %v845_v50  ;;  %769 = vmatprep.mubr.bf16.mxu0 %v1680_v0  ;;  %v952_v53 = vpop.permute.xlu1 %951 }
  0xb4   : > { %1578 = vmatprep.subr.bf16.mxu1 %v1682_v4  ;;  %v961_v59 = vsel %vm959_vm8, %v954_v51, %v956_v52  ;;  %v960_v3 = vsel %vm959_vm8, %v952_v53, %v954_v51 }
  0xb7   : > { %v842_v55 = vpop.permute.xlu0 %841  ;;  %v958_v57 = vpop.permute.xlu1 %957 }
  0xb8   : > { %v846_v56 = vsel %vm843_vm7, %v840_v44, %v842_v55  ;;  %1575 = vmatmul.mubr.msk.bf16.vlgmr.msra.gmra.mrb[16].mxu1 %vm284_vm3, %v1667_v54  ;;  %v962_v62 = vsel %vm959_vm8, %v956_v52, %v958_v57 }
  0xb9   : > { %1579 = vmatpush3.bf16.msra.mxu1 %v846_v56  ;;  %1580 = vmatprep.mubr.msk.bf16.mxu1 %vm1684_vm0, %v1682_v4  ;;  %v1317_v56 = vlaneseq }
  0xba   : > { %1584 = vmatprep.subr.bf16.mxu1 %v1682_v4 }
  0xbb   : > { %v1072_v60 = vpop.permute.xlu1 %1071  ;;  %v1070_v6 = vpop.permute.xlu0 %1069 }
  0xbc   : > { %v1077_v7 = vsel %vm1075_vm9, %v1070_v6, %v1072_v60 }
  0xbd   : > { %1496 = vmatmul.mubr.msk.bf16.vlgmr.msra.gmra.mrb[0].mxu0 %vm284_vm3, %v1667_v54 }
  0xbe   : > { %854 = vmatpush1.bf16.msra.mxu0 %v844_v58  ;;  %885 = vmatprep.mubr.bf16.mxu0 %v1680_v0 }
  0xbf   : > { %969 = vmatprep.subr.bf16.mxu0 %v961_v59  ;;  %v1074_v63 = vpop.permute.xlu1 %1073  ;;  %v1068_v10 = vpop.permute.xlu0 %1067 }
  0xc0   : > { %1581 = vmatmul.mubr.msk.bf16.vlgmr.msra.gmra.mrb[20].mxu1 %vm284_vm3, %v1668_v61  ;;  %v1078_v5 = vsel %vm1075_vm9, %v1072_v60, %v1074_v63  ;;  %v1076_v12 = vsel %vm1075_vm9, %v1068_v10, %v1070_v6  ;;  %v1318_v63 = vshrl.u32 %v1317_v56, 7 }
  0xc1   : > { %1585 = vmatpush3.bf16.msra.mxu1 %v962_v62  ;;  %1586 = vmatprep.mubr.msk.bf16.mxu1 %vm1684_vm0, %v1682_v4 }
  0xc2   : > { %1590 = vmatprep.subr.bf16.mxu1 %v1682_v4 }
  0xc3   : > { %v1188_v2 = vpop.permute.xlu1 %1187  ;;  %v1186_v13 = vpop.permute.xlu0 %1185 }
  0xc4   : > { %v1193_v14 = vsel %vm1191_vm10, %v1186_v13, %v1188_v2 }
  0xc7   : > { %v1190_v8 = vpop.permute.xlu1 %1189  ;;  %v1184_v16 = vpop.permute.xlu0 %1183 }
  0xc8   : > { %1587 = vmatmul.mubr.msk.bf16.vlgmr.msra.gmra.mrb[24].mxu1 %vm284_vm3, %v1669_v1  ;;  %v1194_v11 = vsel %vm1191_vm10, %v1188_v2, %v1190_v8 }
  0xc9   : > { %1501 = vmatmul.mubr.msk.bf16.vlgmr.msra.gmra.mrb[0].mxu0 %vm284_vm3, %v1668_v61  ;;  %1591 = vmatpush3.bf16.msra.mxu1 %v1078_v5  ;;  %v1315_v5 = vld [vmem:[%s1875_s3] sm:$0x7] }
  0xca   : > { %970 = vmatpush1.bf16.msra.mxu0 %v960_v3  ;;  %1592 = vmatprep.mubr.msk.bf16.mxu1 %vm1684_vm0, %v1682_v4 }
  0xcb   : > { %1085 = vmatprep.subr.bf16.mxu0 %v1077_v7  ;;  %1001 = vmatprep.mubr.bf16.mxu0 %v1680_v0 }
  0xcc   : > { %1596 = vmatprep.subr.bf16.mxu1 %v1682_v4 }
  0xd0   : > { %1593 = vmatmul.mubr.msk.bf16.vlgmr.msra.gmra.mrb[28].mxu1 %vm284_vm3, %v1670_v9 }
  0xd1   : > { %1597 = vmatpush3.bf16.msra.mxu1 %v1194_v11  ;;  %1598 = vmatprep.mubr.msk.bf16.mxu1 %vm1684_vm0, %v1682_v4  ;;  %v1192_v4 = vsel %vm1191_vm10, %v1184_v16, %v1186_v13 }
  0xd5   : > { %1506 = vmatmul.mubr.msk.bf16.vlgmr.msra.gmra.mrb[0].mxu0 %vm284_vm3, %v1669_v1  ;;  %v1327_v1 = vsub.s32 2, %v1318_v63 }
  0xd6   : > { %1086 = vmatpush1.bf16.msra.mxu0 %v1076_v12  ;;  %1117 = vmatprep.mubr.bf16.mxu0 %v1680_v0 }
  0xd7   : > { %1201 = vmatprep.subr.bf16.mxu0 %v1193_v14  ;;  %v1328_v13 = vrot.slane %v1315_v5, %v1327_v1 }
  0xd8   : > { %1599 = vmatmul.mubr.msk.bf16.vlgmr.msra.gmra.mrb[32].mxu1 %vm284_vm3, %v1671_v15  ;;  %v1296_v3 = vpop.permute.xlu0 %1295 }
  0xe1   : > { %1511 = vmatmul.mubr.msk.bf16.vlgmr.msra.gmra.mrb[0].mxu0 %vm284_vm3, %v1670_v9  ;;  %v1301_v9 = vpop.permute.xlu1 %1300 }
  0xe2   : > { %1202 = vmatpush1.bf16.msra.mxu0 %v1192_v4  ;;  %1233 = vmatprep.mubr.bf16.mxu0 %v1680_v0 }
  0xed   : > { %1516 = vmatmul.mubr.msk.bf16.vlgmr.msra.gmra.mrb[0].mxu0 %vm284_vm3, %v1671_v15 }
 0x16b   : > { %v365_v17 = vpop.f32.mrb[0].mxu1 }
 0x16c   : > { %v1552_v18 = vpop.f32.mrb[1].mxu1 }
 0x16d   : > { %v368_v19 = vpop.f32.mrb[2].mxu1 }
 0x16e   : > { %v1553_v20 = vpop.f32.mrb[3].mxu1 }
 0x16f   : > { %v1319_v20 = vsub.s32 0, %v1318_v63 }
 0x173   : > { %v472_v21 = vpop.f32.mrb[4].mxu1 }
 0x174   : > { %v473_v22 = vadd.f32 %v472_v21, %v365_v17  ;;  %v1558_v23 = vpop.f32.mrb[5].mxu1  ;;  %v1323_v21 = vsub.s32 1, %v1318_v63 }
 0x175   : > { %v475_v24 = vpop.f32.mrb[6].mxu1 }
 0x176   : > { %v476_v25 = vadd.f32 %v475_v24, %v368_v19  ;;  %v1559_v26 = vpop.f32.mrb[7].mxu1  ;;  %v1320_v24 = vrot.slane %v1315_v5, %v1319_v20 }
 0x17b   : > { %v582_v27 = vpop.f32.mrb[8].mxu1 }
 0x17c   : > { %v591_v28 = vadd.f32 %v582_v27, %v473_v22  ;;  %v1564_v29 = vpop.f32.mrb[9].mxu1  ;;  %v1324_v27 = vrot.slane %v1315_v5, %v1323_v21 }
 0x17d   : > { %v585_v30 = vpop.f32.mrb[10].mxu1 }
 0x17e   : > { %v594_v31 = vadd.f32 %v585_v30, %v476_v25  ;;  %v1565_v32 = vpop.f32.mrb[11].mxu1 }
 0x183   : > { %v698_v33 = vpop.f32.mrb[12].mxu1 }
 0x184   : > { %v707_v0 = vadd.f32 %v698_v33, %v591_v28  ;;  %v1570_v34 = vpop.f32.mrb[13].mxu1 }
 0x185   : > { %v701_v35 = vpop.f32.mrb[14].mxu1 }
 0x186   : > { %v710_v36 = vadd.f32 %v701_v35, %v594_v31  ;;  %v1571_v37 = vpop.f32.mrb[15].mxu1 }
 0x18b   : > { %v814_v38 = vpop.f32.mrb[16].mxu1 }
 0x18c   : > { %v823_v39 = vadd.f32 %v814_v38, %v707_v0  ;;  %v1576_v40 = vpop.f32.mrb[17].mxu1 }
 0x18d   : > { %v817_v41 = vpop.f32.mrb[18].mxu1 }
 0x18e   : > { %v826_v42 = vadd.f32 %v817_v41, %v710_v36  ;;  %v1577_v43 = vpop.f32.mrb[19].mxu1 }
 0x193   : > { %v930_v44 = vpop.f32.mrb[20].mxu1 }
 0x194   : > { %v939_v45 = vadd.f32 %v930_v44, %v823_v39  ;;  %v1582_v46 = vpop.f32.mrb[21].mxu1 }
 0x195   : > { %v933_v47 = vpop.f32.mrb[22].mxu1 }
 0x196   : > { %v942_v48 = vadd.f32 %v933_v47, %v826_v42  ;;  %v1583_v49 = vpop.f32.mrb[23].mxu1 }
 0x19b   : > { %v1046_v50 = vpop.f32.mrb[24].mxu1 }
 0x19c   : > { %v1055_v51 = vadd.f32 %v1046_v50, %v939_v45  ;;  %v1588_v52 = vpop.f32.mrb[25].mxu1 }
 0x19d   : > { %v1049_v53 = vpop.f32.mrb[26].mxu1 }
 0x19e   : > { %v1058_v54 = vadd.f32 %v1049_v53, %v942_v48  ;;  %v1589_v55 = vpop.f32.mrb[27].mxu1 }
 0x1a3   : > { %v1162_v57 = vpop.f32.mrb[28].mxu1 }
 0x1a4   : > { %v1171_v58 = vadd.f32 %v1162_v57, %v1055_v51  ;;  %v1594_v59 = vpop.f32.mrb[29].mxu1 }
 0x1a5   : > { %v1165_v60 = vpop.f32.mrb[30].mxu1 }
 0x1a6   : > { %v1174_v61 = vadd.f32 %v1165_v60, %v1058_v54  ;;  %v1595_v62 = vpop.f32.mrb[31].mxu1 }
 0x1ab   : > { %v1278_v2 = vpop.f32.mrb[32].mxu1 }
 0x1ac   : > { %v1287_v6 = vadd.f32 %v1278_v2, %v1171_v58  ;;  %v1600_v7 = vpop.f32.mrb[33].mxu1 }
 0x1ad   : > { %v1281_v8 = vpop.f32.mrb[34].mxu1 }
 0x1ae   : > { %v1305_v10 = vadd.f32 %v1296_v3, %v1287_v6  ;;  %v1290_v11 = vadd.f32 %v1281_v8, %v1174_v61  ;;  %v1601_v12 = vpop.f32.mrb[35].mxu1 }
 0x1b0   : > { %v1311_v14 = vmax.f32 %v1305_v10, 0.0  ;;  %v1308_v15 = vadd.f32 %v1301_v9, %v1290_v11 }
 0x1b2   : > { %v1314_v16 = vmax.f32 %v1308_v15, 0.0  ;;  %v1334_v4 = vmul.f32 %v1328_v13, %v1311_v14 }
 0x1b4   : > { %v1527_v17 = vpack.c.bf16 %v1334_v4, %v1334_v4  ;;  %v1337_v18 = vmul.f32 %v1328_v13, %v1314_v16 }
 0x1b6   : > { %1359 = vst [vmem:[%s1859_s12 + $0x8] sm:$0xf] %v1527_v17  ;;  %v1529_v19 = vpack.c.bf16 %v1337_v18, %v1337_v18 }
 0x1b8   : > { %1361 = vst [vmem:[%s1859_s12 + $0x14] sm:$0xf] %v1529_v19 }
 0x1c0   : > { %v1235_v22 = vpop.f32.mrb[0].mxu0 }
 0x1c1   : > { %v1303_v23 = vadd.f32 %v1296_v3, %v1235_v22  ;;  %v1237_v25 = vpop.f32.mrb[1].mxu0 }
 0x1c2   : > { %v1304_v26 = vadd.f32 %v1296_v3, %v1237_v25  ;;  %v1239_v28 = vpop.f32.mrb[2].mxu0 }
 0x1c3   : > { %v1309_v29 = vmax.f32 %v1303_v23, 0.0  ;;  %v1306_v30 = vadd.f32 %v1301_v9, %v1239_v28  ;;  %v1241_v31 = vpop.f32.mrb[3].mxu0 }
 0x1c4   : > { %v1310_v32 = vmax.f32 %v1304_v26, 0.0  ;;  %v1307_v33 = vadd.f32 %v1301_v9, %v1241_v31 }
 0x1c5   : > { %v1332_v0 = vmul.f32 %v1320_v24, %v1309_v29  ;;  %v1312_v34 = vmax.f32 %v1306_v30, 0.0 }
 0x1c6   : > { %v1333_v35 = vmul.f32 %v1324_v27, %v1310_v32  ;;  %v1313_v36 = vmax.f32 %v1307_v33, 0.0 }
 0x1c7   : > { %v1335_v37 = vmul.f32 %v1320_v24, %v1312_v34 }
 0x1c8   : > { %v1526_v38 = vpack.c.bf16 %v1333_v35, %v1332_v0  ;;  %v1336_v39 = vmul.f32 %v1324_v27, %v1313_v36  ;;  %v1362_v40 = vadd.f32 %v1333_v35, %v1332_v0 }
 0x1ca   : > { %1358 = vst [vmem:[%s1859_s12] sm:$0xff] %v1526_v38  ;;  %v1528_v41 = vpack.c.bf16 %v1336_v39, %v1335_v37  ;;  %v1363_v42 = vadd.f32 %v1362_v40, %v1334_v4  ;;  %v1366_v43 = vadd.f32 %v1336_v39, %v1335_v37 }
 0x1cc   : > { %1360 = vst [vmem:[%s1859_s12 + $0xc] sm:$0xff] %v1528_v41  ;;  %1364 = vadd.xlane.f32.xlu1 %v1363_v42  ;;  %v1367_v44 = vadd.f32 %v1366_v43, %v1337_v18 }
 0x1ce   : > { %1368 = vadd.xlane.f32.xlu0 %v1367_v44 }
 0x259   : > { %v1365_v45 = vpop.xlane.xlu1 %1364 }
 0x25a   : > { %1371 = vst.msk [vmem:[%s237_s16] sm:$0xff] %vm1370_vm11, %v1365_v45 }
 0x25b   : > { %v1369_v46 = vpop.xlane.xlu0 %1368 }
 0x25c   : > { %1372 = vst.msk [vmem:[%s237_s16 + $0x8] sm:$0xff] %vm1370_vm11, %v1369_v46 }
 0x25d PF: > { %s16_s18 = sadd.s32 1, %s1678_s18  }
 0x25e   : > { %p13_p4 = scmp.ge.s32.totalorder %s16_s18, 4  }
 0x260   :  { %15 = sbr.rel (!%p13_p4) target bundleno = 1 (0x1), region = 86 }

// kernel: sk_conv_forward.5
= control target key start
LH: loop header
LB: loop body
LE: loop exit
PB: predicated region body
PF: predicated region fallthrough
CT: control target
= control target key end

     0   :  { %s634_s12 = smov 0   ;;  %s636_s13 = smov 0   ;;  %s706_s0 = inlined_call_operand.vmem [shape: f32[2,2,16,1], index: 0, kind: input, shape index: {}]   ;;  %s707_s1 = inlined_call_operand.vmem [shape: bf16[2,16,384], index: 1, kind: input, shape index: {}]   ;;  %s708_s2 = inlined_call_operand.vmem [shape: bf16[2,16,384], index: 2, kind: input, shape index: {}]   ;;  %s709_s3 = inlined_call_operand.vmem [shape: f32[2,16,384], index: 3, kind: output, shape index: {}]  }
   0x1   :  { %s638_s14 = smov 0   ;;  %s640_s15 = smov 0  }
   0x2   :  { %s642_s16 = smov 0  }
   0x3 LB: > { %s25_s17 = sadd.s32 1, %s607_s15  ;;  %p39_p1 = scmp.ne.s32.totalorder %s599_s13, %s595_s12  ;;  %s611_s16 = sphi %s642_s16, %s13_s16   ;;  %s607_s15 = sphi %s640_s15, %s713_s15   ;;  %s603_s14 = sphi %s638_s14, %s712_s14   ;;  %s599_s13 = sphi %s636_s13, %s711_s13   ;;  %s595_s12 = sphi %s634_s12, %s710_s12  }
   0x4   : > { %p27_p0 = scmp.ge.s32.totalorder %s25_s17, 2  ;;  %p40_p2 = scmp.eq.s32.totalorder %s611_s16, 0 }
   0x5   : > { %s32_s19 = sadd.s32 1, %s599_s13  ;;  %p514_p5 = scmp.ge.s32.totalorder %s611_s16, 2 }
   0x6   : > { %s715_s17 = smov (%p27_p0, %s25_s17), 0  ;;  %p41_p3 = por %p40_p2, %p39_p1 }
   0x7   : > { %s29_s18 = ssub.s32 %s607_s15, %s715_s17  ;;  %149 = sbr.rel (%p514_p5) target bundleno = 21 (0x15), region = 16 }
   0x8   : > { %p30_p4 = scmp.eq.s32.totalorder %s29_s18, 0 }
   0xa   : > { %s669_s20 = scalar_select %p30_p4, %s599_s13, %s32_s19  }
   0xe   : > { %152 = sbr.rel (!%p41_p3) target bundleno = 21 (0x15), region = 20  ;;  %s154_s21 = sand.u32 (%p41_p3), 1, %s599_s13  }
   0xf   : > { %s527_s22 = sshll.u32 (%p41_p3), %s607_s15, 4  ;;  %s515_s23 = sshll.u32 (%p41_p3), %s154_s21, 5 }
  0x10   : > { %s159_s26 = scalar_lea.vmem (%p41_p3), %s706_s0, %s527_s22  ;;  %s156_s27 = scalar_lea.vmem (%p41_p3), [#allocation2], %s515_s23 }
  0x11   : > { %v193_v0 = vld [vmem:[%s159_s26] sm:$0xff] (%p41_p3)  ;;  %v195_v1 = vld [vmem:[%s159_s26 + $0x8] sm:$0xff] (%p41_p3) }
  0x12   : > { %v197_v2 = vld [vmem:[%s159_s26 + $0x20] sm:$0xff] (%p41_p3)  ;;  %194 = vst [vmem:[%s156_s27] sm:$0xff] (%p41_p3), %v193_v0  ;;  %196 = vst [vmem:[%s156_s27 + $0x8] sm:$0xff] (%p41_p3), %v195_v1  ;;  %v199_v3 = vld [vmem:[%s159_s26 + $0x28] sm:$0xff] (%p41_p3) }
  0x13   : > { %198 = vst [vmem:[%s156_s27 + $0x10] sm:$0xff] (%p41_p3), %v197_v2  ;;  %200 = vst [vmem:[%s156_s27 + $0x18] sm:$0xff] (%p41_p3), %v199_v3 }
  0x15 PF: > { %p518_p6 = scmp.ge.s32.totalorder %s611_s16, 1  ;;  %p231_p7 = scmp.lt.s32.totalorder %s611_s16, 3 }
  0x17   : > { %p232_p8 = pnand %p518_p6, %p231_p7 }
  0x18   : > { %s238_s28 = sand.u32 (!%p232_p8), 1, %s595_s12   ;;  %v613_v4 = vmov (!%p232_p8), 0   ;;  %p284_p9 = scmp.lt.s32.totalorder (!%p232_p8), %s603_s14, 1 }
  0x19   : > { %235 = sbr.rel (%p232_p8) target bundleno = 166 (0xa6), region = 66  ;;  %572 = vset.pattern.permute.xlu1 (!%p232_p8), %v613_v4  ;;  %571 = vset.pattern.permute.xlu0 (!%p232_p8), %v613_v4  ;;  %s519_s29 = sshll.u32 (!%p232_p8), %s238_s28, 5 }
  0x1a   : > { %s240_s30 = scalar_lea.vmem (!%p232_p8), [#allocation2], %s519_s29 }
  0x1b   : > { %v523_v5 = vld [vmem:[%s240_s30 + $0x10] sm:$0xff] (!%p232_p8)  ;;  %v323_v6 = vld [vmem:[%s240_s30] sm:$0xff] (!%p232_p8)  ;;  %v524_v7 = vld [vmem:[%s240_s30 + $0x18] sm:$0xff] (!%p232_p8) }
  0x1c   : > { %362 = vperm.xlu1 (!%p232_p8), %572, %v523_v5   ;;  %327 = vperm.xlu0 (!%p232_p8), %571, %v323_v6   ;;  %v324_v8 = vld [vmem:[%s240_s30 + $0x8] sm:$0xff] (!%p232_p8) }
  0x20   : > { %367 = vperm.xlu1 %572, %v524_v7   ;;  %332 = vperm.xlu0 %571, %v324_v8   ;;  %s717_s14 = smov (!%p284_p9, %s603_s14), 1 }
  0x21   : > { %s528_s4 = smul.u32 24, %s717_s14 }
  0x22   : > { %s529_s11 = smul.u32 48, %s717_s14 }
  0x23   : > { %s301_s7 = scalar_lea.vmem %s708_s2, %s528_s4  ;;  %s291_s10 = scalar_lea.vmem %s707_s1, %s528_s4 }
  0x24   : > { %v347_v9 = vld [vmem:[%s301_s7] sm:$0xff]  ;;  %v348_v10 = vld [vmem:[%s301_s7 + $0x8] ss:$12 sps:$4 sm:$0xff]   ;;  %v349_v17 = vld [vmem:[%s301_s7 + $0xc] sm:$0xff]  ;;  %s311_s19 = scalar_lea.vmem %s709_s3, %s529_s11 }
  0x25   : > { %v313_v11 = vld [vmem:[%s291_s10] sm:$0xff]  ;;  %v314_v12 = vld [vmem:[%s291_s10 + $0x8] ss:$12 sps:$4 sm:$0xff]   ;;  %v351_v13 = vunpack.c.l.bf16 %v347_v9  ;;  %v352_v14 = vunpack.c.h.bf16 %v347_v9  ;;  %v353_v15 = vunpack.c.l.bf16 %v348_v10  ;;  %v315_v18 = vld [vmem:[%s291_s10 + $0xc] sm:$0xff]  ;;  %v354_v23 = vunpack.c.l.bf16 %v349_v17 }
  0x26   : > { %v317_v16 = vunpack.c.l.bf16 %v313_v11  ;;  %v318_v19 = vunpack.c.h.bf16 %v313_v11  ;;  %v319_v20 = vunpack.c.l.bf16 %v314_v12  ;;  %v355_v24 = vunpack.c.h.bf16 %v349_v17 }
  0x27   : > { %v356_v25 = vunpack.c.h.bf16 %v348_v10  ;;  %v320_v26 = vunpack.c.l.bf16 %v315_v18  ;;  %v321_v33 = vunpack.c.h.bf16 %v315_v18  ;;  %v322_v34 = vunpack.c.h.bf16 %v314_v12 }
  0x9b   : > { %v363_v21 = vpop.permute.xlu1 %362  ;;  %v328_v22 = vpop.permute.xlu0 %327 }
  0x9c   : > { %v370_v27 = vmul.f32 %v363_v21, %v351_v13  ;;  %v371_v28 = vmul.f32 %v363_v21, %v352_v14  ;;  %v372_v29 = vmul.f32 %v363_v21, %v353_v15  ;;  %v335_v30 = vmul.f32 %v328_v22, %v317_v16 }
  0x9d   : > { %v336_v31 = vmul.f32 %v328_v22, %v318_v19  ;;  %v337_v32 = vmul.f32 %v328_v22, %v319_v20 }
  0x9e   : > { %v376_v35 = vadd.f32 %v370_v27, %v335_v30 }
  0x9f   : > { %v377_v36 = vadd.f32 %v371_v28, %v336_v31  ;;  %v378_v37 = vadd.f32 %v372_v29, %v337_v32  ;;  %v368_v38 = vpop.permute.xlu1 %367  ;;  %v333_v39 = vpop.permute.xlu0 %332 }
  0xa0   : > { %382 = vst [vmem:[%s311_s19] sm:$0xff] %v376_v35  ;;  %v373_v40 = vmul.f32 %v368_v38, %v354_v23  ;;  %v374_v41 = vmul.f32 %v368_v38, %v355_v24  ;;  %v375_v42 = vmul.f32 %v368_v38, %v356_v25  ;;  %v338_v43 = vmul.f32 %v333_v39, %v320_v26 }
  0xa1   : > { %383 = vst [vmem:[%s311_s19 + $0x8] sm:$0xff] %v377_v36  ;;  %384 = vst [vmem:[%s311_s19 + $0x10] sm:$0xff] %v378_v37  ;;  %v339_v44 = vmul.f32 %v333_v39, %v321_v33  ;;  %v340_v45 = vmul.f32 %v333_v39, %v322_v34 }
  0xa2   : > { %v379_v46 = vadd.f32 %v373_v40, %v338_v43 }
  0xa3   : > { %v380_v47 = vadd.f32 %v374_v41, %v339_v44  ;;  %v381_v48 = vadd.f32 %v375_v42, %v340_v45 }
  0xa4   : > { %385 = vst [vmem:[%s311_s19 + $0x18] sm:$0xff] %v379_v46 }
  0xa5   : > { %386 = vst [vmem:[%s311_s19 + $0x20] sm:$0xff] %v380_v47  ;;  %387 = vst [vmem:[%s311_s19 + $0x28] sm:$0xff] %v381_v48 }
  0xa6 PF: > { %s13_s16 = sadd.s32 1, %s611_s16   ;;  %s710_s12 = smov %s599_s13 }
  0xa7   : > { %p10_p10 = scmp.ge.s32.totalorder %s13_s16, 4   ;;  %s711_s13 = smov %s669_s20 }
  0xa8   : > { %s712_s14 = smov %s607_s15  ;;  %s713_s15 = smov %s715_s17 }
  0xa9   :  { %12 = sbr.rel (!%p10_p10) target bundleno = 3 (0x3), region = 112 }

// kernel: sk_conv_forward.4
= control target key start
LH: loop header
LB: loop body
LE: loop exit
PB: predicated region body
PF: predicated region fallthrough
CT: control target
= control target key end

     0   :  { %s3884_s18 = smov 0   ;;  %s4635_s0 = inlined_call_operand.vmem [shape: bf16[2,16,468], index: 0, kind: input, shape index: {}]   ;;  %s4636_s1 = inlined_call_operand.vmem [shape: bf16[25,16,16], index: 1, kind: input, shape index: {}]   ;;  %s4637_s2 = inlined_call_operand.vmem [shape: f32[16,1], index: 2, kind: input, shape index: {}]   ;;  %s4638_s3 = inlined_call_operand.vmem [shape: f32[1,384], index: 3, kind: input, shape index: {}]   ;;  %s4639_s4 = inlined_call_operand.vmem [shape: bf16[2,16,384], index: 4, kind: output, shape index: {0}]   ;;  %s4640_s5 = inlined_call_operand.vmem [shape: f32[2,16,1], index: 5, kind: output, shape index: {1}]  }
   0x1 LB: > { %s3305_s19 = sadd.s32 4294967295, %s3825_s18   ;;  %p3309_p0 = scmp.ge.s32.totalorder %s3825_s18, 1  ;;  %s3825_s18 = sphi %s3884_s18, %s16_s18  }
   0x2   : > { %p190_p1 = scmp.lt.s32.totalorder %s3825_s18, 3 }
   0x4   : > { %p191_p2 = pnand %p3309_p0, %p190_p1 }
   0x5   : > { %p223_p3 = scmp.lt.s32.totalorder (!%p191_p2), %s3305_s19, 1  ;;  %v3827_v0 = vmov (!%p191_p2), 0   ;;  %s3828_s24 = smov (!%p191_p2), 127   ;;  %v3835_v4 = vmov (!%p191_p2), 0.0   ;;  %vm3836_vm0 = vmmov (!%p191_p2), 0   ;;  %vm277_vm1 = vcmask (!%p191_p2), 1039360  }
   0x6   : > { %194 = sbr.rel (%p191_p2) target bundleno = 797 (0x31d), region = 36  ;;  %320 = vmatprep.mubr.bf16.mxu0 (!%p191_p2), %v3827_v0  ;;  %3786 = vset.pattern.permute.xlu0 (!%p191_p2), %v3827_v0  ;;  %s3829_s25 = smov (!%p191_p2), 126   ;;  %vm483_vm2 = vcmask (!%p191_p2), 1031168   ;;  %v4034_v12 = vld [vmem:[%s4636_s1 + $0x8] sm:$0xff] (!%p191_p2)   ;;  %vm284_vm3 = vcmask (!%p191_p2), 130048   ;;  %vm599_vm4 = vcmask (!%p191_p2), 1022976  }
   0x7   : > { %3787 = vset.pattern.permute.xlu1 (!%p191_p2), %v3827_v0  ;;  %s3830_s26 = smov (!%p191_p2), 125   ;;  %s3831_s27 = smov (!%p191_p2), 124   ;;  %3504 = vmatprep.subr.bf16.mxu1 (!%p191_p2), %v3835_v4  ;;  %v4062_v20 = vld [vmem:[%s4636_s1] sm:$0xff] (!%p191_p2)   ;;  %vm715_vm5 = vcmask (!%p191_p2), 1014784   ;;  %v4091_v29 = vld [vmem:[%s4636_s1 + $0x10] sm:$0xff] (!%p191_p2)   ;;  %vm831_vm6 = vcmask (!%p191_p2), 883712  }
   0x8   : > { %s3832_s28 = smov (!%p191_p2), 108   ;;  %s3833_s29 = smov (!%p191_p2), 107   ;;  %3506 = vmatprep.mubr.msk.bf16.mxu1 (!%p191_p2), %vm3836_vm0, %v3835_v4  ;;  %v4125_v38 = vld [vmem:[%s4636_s1 + $0x18] sm:$0xff] (!%p191_p2)   ;;  %vm947_vm7 = vcmask (!%p191_p2), 875520   ;;  %v4163_v48 = vld [vmem:[%s4636_s1 + $0x20] sm:$0xff] (!%p191_p2)   ;;  %vm1063_vm8 = vcmask (!%p191_p2), 867328  }
   0x9   : > { %s3834_s30 = smov (!%p191_p2), 106   ;;  %s3837_s6 = smov (!%p191_p2), 105   ;;  %v3799_v58 = vld [vmem:[%s4636_s1 + $0x28] sm:$0xff] (!%p191_p2)   ;;  %vm1179_vm9 = vcmask (!%p191_p2), 859136   ;;  %vm1295_vm10 = vcmask (!%p191_p2), 850944   ;;  %vm1411_vm11 = vcmask (!%p191_p2), 719872  }
   0xa   : > { %s3838_s7 = smov (!%p191_p2), 104   ;;  %s3839_s8 = smov (!%p191_p2), 88   ;;  %vm1527_vm12 = vcmask (!%p191_p2), 711680   ;;  %vm1643_vm13 = vcmask (!%p191_p2), 703488   ;;  %vm1759_vm14 = vcmask (!%p191_p2), 695296   ;;  %vm1875_vm15 = vcmask (!%p191_p2), 687104  }
   0xb   : > { %s3840_s9 = smov (!%p191_p2), 87   ;;  %s3841_s10 = smov (!%p191_p2), 86  }
   0xc   : > { %s3842_s11 = smov (!%p191_p2), 85   ;;  %s3843_s12 = smov (!%p191_p2), 84  }
   0xd   : > { %s4642_s19 = smov (!%p223_p3, %s3305_s19), 1  ;;  %s3844_s13 = smov 68  }
   0xe   : > { %s3448_s20 = sshll.u32 %s4642_s19, 5  ;;  %s3845_s14 = smov 67  }
   0xf   : > { %s3900_s23 = scalar_lea.vmem %s4635_s0, %s3448_s20  ;;  %s3846_s17 = smov 66  }
  0x10   : > { %v3904_v1 = vld [vmem:[%s3900_s23 + $0x4] ss:$16 sps:$4 sm:$0xff]   ;;  %v3907_v2 = vld [vmem:[%s3900_s23] ss:$16 sps:$4 sm:$0xff]   ;;  %v3912_v3 = vld [vmem:[%s3900_s23 + $0x8] ss:$16 sps:$4 sm:$0xff]  }
  0x11   : > { %271 = vrot.lane.b32.xlu0 %v3904_v1, %s3828_s24  ;;  %269 = vrot.lane.b32.xlu1 %v3907_v2, %s3828_s24  ;;  %v3962_v5 = vld [vmem:[%s3900_s23 + $0xc] ss:$16 sps:$4 sm:$0xff]   ;;  %s3847_s20 = smov 65   ;;  %s3848_s23 = smov 64  }
  0x15   : > { %273 = vrot.lane.b32.xlu0 %v3912_v3, %s3828_s24  ;;  %477 = vrot.lane.b32.xlu1 %v3904_v1, %s3829_s25 }
  0x19   : > { %479 = vrot.lane.b32.xlu0 %v3912_v3, %s3829_s25  ;;  %475 = vrot.lane.b32.xlu1 %v3907_v2, %s3829_s25 }
  0x1d   : > { %593 = vrot.lane.b32.xlu0 %v3904_v1, %s3830_s26  ;;  %595 = vrot.lane.b32.xlu1 %v3912_v3, %s3830_s26 }
  0x21   : > { %591 = vrot.lane.b32.xlu0 %v3907_v2, %s3830_s26  ;;  %709 = vrot.lane.b32.xlu1 %v3904_v1, %s3831_s27 }
  0x25   : > { %711 = vrot.lane.b32.xlu0 %v3912_v3, %s3831_s27  ;;  %707 = vrot.lane.b32.xlu1 %v3907_v2, %s3831_s27 }
  0x29   : > { %825 = vrot.lane.b32.xlu0 %v3904_v1, %s3832_s28  ;;  %827 = vrot.lane.b32.xlu1 %v3912_v3, %s3832_s28 }
  0x2d   : > { %823 = vrot.lane.b32.xlu0 %v3907_v2, %s3832_s28  ;;  %941 = vrot.lane.b32.xlu1 %v3904_v1, %s3833_s29 }
  0x31   : > { %943 = vrot.lane.b32.xlu0 %v3912_v3, %s3833_s29  ;;  %939 = vrot.lane.b32.xlu1 %v3907_v2, %s3833_s29 }
  0x35   : > { %1057 = vrot.lane.b32.xlu0 %v3904_v1, %s3834_s30  ;;  %1059 = vrot.lane.b32.xlu1 %v3912_v3, %s3834_s30 }
  0x39   : > { %1055 = vrot.lane.b32.xlu0 %v3907_v2, %s3834_s30  ;;  %1173 = vrot.lane.b32.xlu1 %v3904_v1, %s3837_s6 }
  0x3d   : > { %1175 = vrot.lane.b32.xlu0 %v3912_v3, %s3837_s6  ;;  %1171 = vrot.lane.b32.xlu1 %v3907_v2, %s3837_s6 }
  0x41   : > { %275 = vrot.lane.b32.xlu0 %v3962_v5, %s3828_s24  ;;  %1289 = vrot.lane.b32.xlu1 %v3904_v1, %s3838_s7 }
  0x45   : > { %1291 = vrot.lane.b32.xlu0 %v3912_v3, %s3838_s7  ;;  %1287 = vrot.lane.b32.xlu1 %v3907_v2, %s3838_s7 }
  0x49   : > { %481 = vrot.lane.b32.xlu0 %v3962_v5, %s3829_s25  ;;  %1405 = vrot.lane.b32.xlu1 %v3904_v1, %s3839_s8 }
  0x4d   : > { %1407 = vrot.lane.b32.xlu0 %v3912_v3, %s3839_s8  ;;  %1403 = vrot.lane.b32.xlu1 %v3907_v2, %s3839_s8 }
  0x51   : > { %597 = vrot.lane.b32.xlu0 %v3962_v5, %s3830_s26  ;;  %713 = vrot.lane.b32.xlu1 %v3962_v5, %s3831_s27  ;;  %s3849_s26 = smov 48  }
  0x55   : > { %1521 = vrot.lane.b32.xlu0 %v3904_v1, %s3840_s9  ;;  %1523 = vrot.lane.b32.xlu1 %v3912_v3, %s3840_s9 }
  0x59   : > { %1519 = vrot.lane.b32.xlu0 %v3907_v2, %s3840_s9  ;;  %829 = vrot.lane.b32.xlu1 %v3962_v5, %s3832_s28 }
  0x5d   : > { %1637 = vrot.lane.b32.xlu0 %v3904_v1, %s3841_s10  ;;  %1639 = vrot.lane.b32.xlu1 %v3912_v3, %s3841_s10 }
  0x61   : > { %1635 = vrot.lane.b32.xlu0 %v3907_v2, %s3841_s10  ;;  %945 = vrot.lane.b32.xlu1 %v3962_v5, %s3833_s29  ;;  %s3850_s29 = smov 47  }
  0x65   : > { %1061 = vrot.lane.b32.xlu0 %v3962_v5, %s3834_s30  ;;  %1753 = vrot.lane.b32.xlu1 %v3904_v1, %s3842_s11  ;;  %s3851_s30 = smov 46  }
  0x69   : > { %1755 = vrot.lane.b32.xlu0 %v3912_v3, %s3842_s11  ;;  %1751 = vrot.lane.b32.xlu1 %v3907_v2, %s3842_s11 }
  0x6d   : > { %1177 = vrot.lane.b32.xlu0 %v3962_v5, %s3837_s6  ;;  %1869 = vrot.lane.b32.xlu1 %v3904_v1, %s3843_s12 }
  0x71   : > { %1871 = vrot.lane.b32.xlu0 %v3912_v3, %s3843_s12  ;;  %1867 = vrot.lane.b32.xlu1 %v3907_v2, %s3843_s12 }
  0x75   : > { %1293 = vrot.lane.b32.xlu0 %v3962_v5, %s3838_s7  ;;  %1409 = vrot.lane.b32.xlu1 %v3962_v5, %s3839_s8  ;;  %s3852_s8 = smov 45  }
  0x79   : > { %1985 = vrot.lane.b32.xlu0 %v3904_v1, %s3844_s13  ;;  %1987 = vrot.lane.b32.xlu1 %v3912_v3, %s3844_s13 }
  0x7d   : > { %1983 = vrot.lane.b32.xlu0 %v3907_v2, %s3844_s13  ;;  %1525 = vrot.lane.b32.xlu1 %v3962_v5, %s3840_s9 }
  0x81   : > { %2101 = vrot.lane.b32.xlu0 %v3904_v1, %s3845_s14  ;;  %2103 = vrot.lane.b32.xlu1 %v3912_v3, %s3845_s14 }
  0x83   : > { %v272_v6 = vpop.permute.xlu0 %271  ;;  %v270_v7 = vpop.permute.xlu1 %269 }
  0x84   : > { %v278_v11 = vsel %vm277_vm1, %v270_v7, %v272_v6 }
  0x85   : > { %2099 = vrot.lane.b32.xlu0 %v3907_v2, %s3845_s14  ;;  %1641 = vrot.lane.b32.xlu1 %v3962_v5, %s3841_s10  ;;  %s3750_s10 = smul.u32 24, %s4642_s19 }
  0x87   : > { %v4026_v8 = vpop.permute.xlu0 %273  ;;  %v478_v9 = vpop.permute.xlu1 %477 }
  0x88   : > { %v279_v10 = vsel %vm277_vm1, %v272_v6, %v4026_v8 }
  0x89   : > { %288 = vmatprep.subr.bf16.mxu0 %v279_v10  ;;  %1757 = vrot.lane.b32.xlu0 %v3962_v5, %s3842_s11  ;;  %s3853_s11 = smov 44  }
  0x8a   : > { %289 = vmatpush1.bf16.msra.mxu0 %v278_v11  ;;  %2217 = vrot.lane.b32.xlu1 %v3904_v1, %s3846_s17 }
  0x8b   : > { %v4040_v13 = vpop.permute.xlu0 %479  ;;  %383 = vmatprep.subr.bf16.mxu0 %v3904_v1  ;;  %v476_v14 = vpop.permute.xlu1 %475 }
  0x8c   : > { %v485_v15 = vsel %vm483_vm2, %v478_v9, %v4040_v13  ;;  %v484_v21 = vsel %vm483_vm2, %v476_v14, %v478_v9 }
  0x8d   : > { %3322 = vmatmul.mubr.msk.bf16.vlgmr.msra.gmra.mrb[0].mxu0 %vm284_vm3, %v4034_v12  ;;  %2219 = vrot.lane.b32.xlu0 %v3912_v3, %s3846_s17 }
  0x8e   : > { %384 = vmatpush1.bf16.msra.mxu0 %v3907_v2  ;;  %415 = vmatprep.mubr.bf16.mxu0 %v3827_v0 }
  0x8f   : > { %v594_v16 = vpop.permute.xlu0 %593  ;;  %493 = vmatprep.subr.bf16.mxu0 %v485_v15  ;;  %2215 = vrot.lane.b32.xlu1 %v3907_v2, %s3846_s17  ;;  %v4053_v17 = vpop.permute.xlu1 %595 }
  0x90   : > { %v601_v24 = vsel %vm599_vm4, %v594_v16, %v4053_v17 }
  0x91   : > { %1873 = vrot.lane.b32.xlu0 %v3962_v5, %s3843_s12 }
  0x93   : > { %v592_v18 = vpop.permute.xlu0 %591  ;;  %2333 = vrot.lane.b32.xlu1 %v3904_v1, %s3847_s20  ;;  %v710_v19 = vpop.permute.xlu1 %709 }
  0x94   : > { %v600_v30 = vsel %vm599_vm4, %v592_v18, %v594_v16 }
  0x95   : > { %2335 = vrot.lane.b32.xlu0 %v3912_v3, %s3847_s20 }
  0x97   : > { %v4067_v22 = vpop.permute.xlu0 %711  ;;  %2331 = vrot.lane.b32.xlu1 %v3907_v2, %s3847_s20  ;;  %v708_v23 = vpop.permute.xlu1 %707 }
  0x98   : > { %v717_v33 = vsel %vm715_vm5, %v710_v19, %v4067_v22  ;;  %v716_v39 = vsel %vm715_vm5, %v708_v23, %v710_v19 }
  0x99   : > { %3325 = vmatmul.mubr.msk.bf16.vlgmr.msra.gmra.mrb[0].mxu0 %vm284_vm3, %v4062_v20  ;;  %1989 = vrot.lane.b32.xlu0 %v3962_v5, %s3844_s13  ;;  %s4622_s13 = scalar_lea.vmem %s4639_s4, %s3750_s10 }
  0x9a   : > { %494 = vmatpush1.bf16.msra.mxu0 %v484_v21  ;;  %525 = vmatprep.mubr.bf16.mxu0 %v3827_v0 }
  0x9b   : > { %v4078_v25 = vpop.permute.xlu0 %825  ;;  %609 = vmatprep.subr.bf16.mxu0 %v601_v24  ;;  %2105 = vrot.lane.b32.xlu1 %v3962_v5, %s3845_s14  ;;  %v4082_v26 = vpop.permute.xlu1 %827  ;;  %s3449_s14 = sshll.u32 %s4642_s19, 4 }
  0x9c   : > { %v833_v42 = vsel %vm831_vm6, %v4078_v25, %v4082_v26 }
  0x9d   : > { %2449 = vrot.lane.b32.xlu0 %v3904_v1, %s3848_s23 }
  0x9f   : > { %v824_v27 = vpop.permute.xlu0 %823  ;;  %2451 = vrot.lane.b32.xlu1 %v3912_v3, %s3848_s23  ;;  %v4086_v28 = vpop.permute.xlu1 %941 }
  0xa0   : > { %v832_v49 = vsel %vm831_vm6, %v824_v27, %v4078_v25 }
  0xa1   : > { %2447 = vrot.lane.b32.xlu0 %v3907_v2, %s3848_s23 }
  0xa3   : > { %v4095_v31 = vpop.permute.xlu0 %943  ;;  %2221 = vrot.lane.b32.xlu1 %v3962_v5, %s3846_s17  ;;  %v4099_v32 = vpop.permute.xlu1 %939  ;;  %s237_s17 = scalar_lea.vmem %s4640_s5, %s3449_s14 }
  0xa4   : > { %v949_v52 = vsel %vm947_vm7, %v4086_v28, %v4095_v31  ;;  %v948_v59 = vsel %vm947_vm7, %v4099_v32, %v4086_v28 }
  0xa5   : > { %3330 = vmatmul.mubr.msk.bf16.vlgmr.msra.gmra.mrb[0].mxu0 %vm284_vm3, %v4091_v29  ;;  %2565 = vrot.lane.b32.xlu0 %v3904_v1, %s3849_s26 }
  0xa6   : > { %610 = vmatpush1.bf16.msra.mxu0 %v600_v30  ;;  %641 = vmatprep.mubr.bf16.mxu0 %v3827_v0 }
  0xa7   : > { %v4108_v34 = vpop.permute.xlu0 %1057  ;;  %725 = vmatprep.subr.bf16.mxu0 %v717_v33  ;;  %2567 = vrot.lane.b32.xlu1 %v3912_v3, %s3849_s26  ;;  %v4112_v35 = vpop.permute.xlu1 %1059 }
  0xa8   : > { %v1065_v63 = vsel %vm1063_vm8, %v4108_v34, %v4112_v35 }
  0xa9   : > { %2563 = vrot.lane.b32.xlu0 %v3907_v2, %s3849_s26 }
  0xab   : > { %v4116_v36 = vpop.permute.xlu0 %1055  ;;  %2337 = vrot.lane.b32.xlu1 %v3962_v5, %s3847_s20  ;;  %v4120_v37 = vpop.permute.xlu1 %1173 }
  0xad   : > { %2453 = vrot.lane.b32.xlu0 %v3962_v5, %s3848_s23 }
  0xaf   : > { %v4129_v40 = vpop.permute.xlu0 %1175  ;;  %2681 = vrot.lane.b32.xlu1 %v3904_v1, %s3850_s29  ;;  %v4133_v41 = vpop.permute.xlu1 %1171 }
  0xb0   : > { %v1180_v18 = vsel %vm1179_vm9, %v4133_v41, %v4120_v37 }
  0xb1   : > { %3335 = vmatmul.mubr.msk.bf16.vlgmr.msra.gmra.mrb[0].mxu0 %vm284_vm3, %v4125_v38  ;;  %2683 = vrot.lane.b32.xlu0 %v3912_v3, %s3850_s29 }
  0xb2   : > { %726 = vmatpush1.bf16.msra.mxu0 %v716_v39  ;;  %757 = vmatprep.mubr.bf16.mxu0 %v3827_v0 }
  0xb3   : > { %v276_v43 = vpop.permute.xlu0 %275  ;;  %841 = vmatprep.subr.bf16.mxu0 %v833_v42  ;;  %2679 = vrot.lane.b32.xlu1 %v3907_v2, %s3850_s29  ;;  %v4145_v44 = vpop.permute.xlu1 %1289 }
  0xb4   : > { %v280_v45 = vsel %vm277_vm1, %v4026_v8, %v276_v43  ;;  %v3804_v43 = vld [vmem:[%s4636_s1 + $0x50] sm:$0xff]   ;;  %vm1991_vm1 = vcmask 556032  }
  0xb5   : > { %3505 = vmatpush3.bf16.msra.mxu1 %v280_v45  ;;  %2569 = vrot.lane.b32.xlu0 %v3962_v5, %s3849_s26 }
  0xb6   : > { %3510 = vmatprep.subr.bf16.mxu1 %v3835_v4 }
  0xb7   : > { %v4152_v46 = vpop.permute.xlu0 %1291  ;;  %2797 = vrot.lane.b32.xlu1 %v3904_v1, %s3851_s30  ;;  %v4155_v47 = vpop.permute.xlu1 %1287 }
  0xb8   : > { %3507 = vmatmul.mubr.msk.bf16.vlgmr.msra.gmra.mrb[0].mxu1 %vm284_vm3, %v4034_v12  ;;  %v1181_v12 = vsel %vm1179_vm9, %v4120_v37, %v4129_v40  ;;  %v1296_v27 = vsel %vm1295_vm10, %v4155_v47, %v4145_v44 }
  0xb9   : > { %3511 = vmatpush3.bf16.msra.mxu1 %v3912_v3  ;;  %3512 = vmatprep.mubr.msk.bf16.mxu1 %vm3836_vm0, %v3835_v4 }
  0xba   : > { %3516 = vmatprep.subr.bf16.mxu1 %v3835_v4  ;;  %2799 = vrot.lane.b32.xlu0 %v3912_v3, %s3851_s30 }
  0xbb   : > { %v482_v50 = vpop.permute.xlu0 %481  ;;  %2795 = vrot.lane.b32.xlu1 %v3907_v2, %s3851_s30  ;;  %v4172_v51 = vpop.permute.xlu1 %1405 }
  0xbc   : > { %v486_v54 = vsel %vm483_vm2, %v4040_v13, %v482_v50  ;;  %vm2107_vm2 = vcmask 547840  }
  0xbd   : > { %3340 = vmatmul.mubr.msk.bf16.vlgmr.msra.gmra.mrb[0].mxu0 %vm284_vm3, %v4163_v48 }
  0xbe   : > { %842 = vmatpush1.bf16.msra.mxu0 %v832_v49  ;;  %873 = vmatprep.mubr.bf16.mxu0 %v3827_v0 }
  0xbf   : > { %v4180_v53 = vpop.permute.xlu0 %1407  ;;  %957 = vmatprep.subr.bf16.mxu0 %v949_v52  ;;  %2685 = vrot.lane.b32.xlu0 %v3962_v5, %s3850_s29  ;;  %v4186_v55 = vpop.permute.xlu1 %1403 }
  0xc0   : > { %3513 = vmatmul.mubr.msk.bf16.vlgmr.msra.gmra.mrb[4].mxu1 %vm284_vm3, %v4062_v20  ;;  %2801 = vrot.lane.b32.xlu1 %v3962_v5, %s3851_s30  ;;  %v1297_v20 = vsel %vm1295_vm10, %v4145_v44, %v4152_v46 }
  0xc1   : > { %3517 = vmatpush3.bf16.msra.mxu1 %v486_v54  ;;  %3518 = vmatprep.mubr.msk.bf16.mxu1 %vm3836_vm0, %v3835_v4 }
  0xc2   : > { %3522 = vmatprep.subr.bf16.mxu1 %v3835_v4 }
  0xc3   : > { %v598_v56 = vpop.permute.xlu0 %597  ;;  %2913 = vrot.lane.b32.xlu0 %v3904_v1, %s3852_s8  ;;  %v714_v57 = vpop.permute.xlu1 %713 }
  0xc4   : > { %2915 = vrot.lane.b32.xlu1 %v3912_v3, %s3852_s8  ;;  %v602_v61 = vsel %vm599_vm4, %v4053_v17, %v598_v56  ;;  %v718_v9 = vsel %vm715_vm5, %v4067_v22, %v714_v57  ;;  %v3801_v17 = vld [vmem:[%s4636_s1 + $0x38] sm:$0xff]   ;;  %vm2223_vm4 = vcmask 539648   ;;  %vm2339_vm5 = vcmask 531456  }
  0xc7   : > { %v4202_v60 = vpop.permute.xlu0 %1521  ;;  %2911 = vrot.lane.b32.xlu0 %v3907_v2, %s3852_s8  ;;  %v4207_v62 = vpop.permute.xlu1 %1523 }
  0xc8   : > { %3519 = vmatmul.mubr.msk.bf16.vlgmr.msra.gmra.mrb[8].mxu1 %vm284_vm3, %v4091_v29  ;;  %2917 = vrot.lane.b32.xlu1 %v3962_v5, %s3852_s8  ;;  %v1413_v29 = vsel %vm1411_vm11, %v4172_v51, %v4180_v53  ;;  %v1529_v39 = vsel %vm1527_vm12, %v4202_v60, %v4207_v62 }
  0xc9   : > { %3523 = vmatpush3.bf16.msra.mxu1 %v602_v61  ;;  %3345 = vmatmul.mubr.msk.bf16.vlgmr.msra.gmra.mrb[0].mxu0 %vm284_vm3, %v3799_v58 }
  0xca   : > { %958 = vmatpush1.bf16.msra.mxu0 %v948_v59  ;;  %3524 = vmatprep.mubr.msk.bf16.mxu1 %vm3836_vm0, %v3835_v4  ;;  %v3806_v59 = vld [vmem:[%s4636_s1 + $0x60] sm:$0xff]  }
  0xcb   : > { %v4218_v6 = vpop.permute.xlu0 %1519  ;;  %3528 = vmatprep.subr.bf16.mxu1 %v3835_v4  ;;  %1073 = vmatprep.subr.bf16.mxu0 %v1065_v63  ;;  %v830_v7 = vpop.permute.xlu1 %829 }
  0xcc   : > { %989 = vmatprep.mubr.bf16.mxu0 %v3827_v0  ;;  %3031 = vrot.lane.b32.xlu1 %v3912_v3, %s3853_s11  ;;  %v3800_v3 = vld [vmem:[%s4636_s1 + $0x30] sm:$0xff]   ;;  %v1528_v45 = vsel %vm1527_vm12, %v4218_v6, %v4202_v60  ;;  %v3807_v6 = vld [vmem:[%s4636_s1 + $0x68] sm:$0xff]  }
  0xcd   : > { %3029 = vrot.lane.b32.xlu0 %v3904_v1, %s3853_s11  ;;  %v1064_v1 = vsel %vm1063_vm8, %v4116_v36, %v4108_v34  ;;  %v3803_v34 = vld [vmem:[%s4636_s1 + $0x48] sm:$0xff]   ;;  %v1412_v36 = vsel %vm1411_vm11, %v4186_v55, %v4172_v51  ;;  %v3805_v51 = vld [vmem:[%s4636_s1 + $0x58] sm:$0xff]  }
  0xcf   : > { %v4224_v8 = vpop.permute.xlu0 %1637  ;;  %v4228_v10 = vpop.permute.xlu1 %1639 }
  0xd0   : > { %3525 = vmatmul.mubr.msk.bf16.vlgmr.msra.gmra.mrb[12].mxu1 %vm284_vm3, %v4125_v38  ;;  %3033 = vrot.lane.b32.xlu1 %v3962_v5, %s3853_s11  ;;  %v1645_v47 = vsel %vm1643_vm13, %v4224_v8, %v4228_v10 }
  0xd1   : > { %3529 = vmatpush3.bf16.msra.mxu1 %v718_v9  ;;  %3530 = vmatprep.mubr.msk.bf16.mxu1 %vm3836_vm0, %v3835_v4 }
  0xd2   : > { %3534 = vmatprep.subr.bf16.mxu1 %v3835_v4  ;;  %3027 = vrot.lane.b32.xlu0 %v3907_v2, %s3853_s11  ;;  %v834_v2 = vsel %vm831_vm6, %v4082_v26, %v830_v7  ;;  %v3802_v26 = vld [vmem:[%s4636_s1 + $0x40] sm:$0xff]   ;;  %vm2455_vm6 = vcmask 523264  }
  0xd3   : > { %v4243_v11 = vpop.permute.xlu0 %1635  ;;  %v946_v5 = vpop.permute.xlu1 %945 }
  0xd4   : > { %v950_v19 = vsel %vm947_vm7, %v4095_v31, %v946_v5  ;;  %v1644_v55 = vsel %vm1643_vm13, %v4243_v11, %v4224_v8  ;;  %vm2571_vm7 = vcmask 392192  }
  0xd5   : > { %3350 = vmatmul.mubr.msk.bf16.vlgmr.msra.gmra.mrb[0].mxu0 %vm284_vm3, %v3800_v3 }
  0xd6   : > { %1074 = vmatpush1.bf16.msra.mxu0 %v1064_v1  ;;  %1105 = vmatprep.mubr.bf16.mxu0 %v3827_v0  ;;  %v3808_v1 = vld [vmem:[%s4636_s1 + $0x70] sm:$0xff]  }
  0xd7   : > { %v1062_v13 = vpop.permute.xlu0 %1061  ;;  %1189 = vmatprep.subr.bf16.mxu0 %v1181_v12  ;;  %v4254_v14 = vpop.permute.xlu1 %1753 }
  0xd8   : > { %3531 = vmatmul.mubr.msk.bf16.vlgmr.msra.gmra.mrb[16].mxu1 %vm284_vm3, %v4163_v48  ;;  %v1066_v25 = vsel %vm1063_vm8, %v4112_v35, %v1062_v13  ;;  %vm2687_vm8 = vcmask 384000  }
  0xd9   : > { %3535 = vmatpush3.bf16.msra.mxu1 %v834_v2  ;;  %3536 = vmatprep.mubr.msk.bf16.mxu1 %vm3836_vm0, %v3835_v4 }
  0xda   : > { %3540 = vmatprep.subr.bf16.mxu1 %v3835_v4 }
  0xdb   : > { %v4259_v15 = vpop.permute.xlu0 %1755  ;;  %v4261_v16 = vpop.permute.xlu1 %1751 }
  0xdc   : > { %v1761_v56 = vsel %vm1759_vm14, %v4254_v14, %v4259_v15  ;;  %v1760_v63 = vsel %vm1759_vm14, %v4261_v16, %v4254_v14 }
  0xdf   : > { %v1178_v21 = vpop.permute.xlu0 %1177  ;;  %v4276_v22 = vpop.permute.xlu1 %1869 }
  0xe0   : > { %3537 = vmatmul.mubr.msk.bf16.vlgmr.msra.gmra.mrb[20].mxu1 %vm284_vm3, %v3799_v58  ;;  %v1182_v32 = vsel %vm1179_vm9, %v4129_v40, %v1178_v21  ;;  %vm2803_vm9 = vcmask 375808  }
  0xe1   : > { %3541 = vmatpush3.bf16.msra.mxu1 %v950_v19  ;;  %3355 = vmatmul.mubr.msk.bf16.vlgmr.msra.gmra.mrb[0].mxu0 %vm284_vm3, %v3801_v17 }
  0xe2   : > { %1190 = vmatpush1.bf16.msra.mxu0 %v1180_v18  ;;  %3542 = vmatprep.mubr.msk.bf16.mxu1 %vm3836_vm0, %v3835_v4 }
  0xe3   : > { %3546 = vmatprep.subr.bf16.mxu1 %v3835_v4  ;;  %1305 = vmatprep.subr.bf16.mxu0 %v1297_v20  ;;  %v4282_v23 = vpop.permute.xlu0 %1871  ;;  %v4284_v24 = vpop.permute.xlu1 %1867  ;;  %v3810_v20 = vld [vmem:[%s4636_s1 + $0x80] sm:$0xff]  }
  0xe4   : > { %1221 = vmatprep.mubr.bf16.mxu0 %v3827_v0  ;;  %v1877_v7 = vsel %vm1875_vm15, %v4276_v22, %v4282_v23  ;;  %v1876_v12 = vsel %vm1875_vm15, %v4284_v24, %v4276_v22 }
  0xe7   : > { %v1294_v28 = vpop.permute.xlu0 %1293  ;;  %v1410_v30 = vpop.permute.xlu1 %1409 }
  0xe8   : > { %3543 = vmatmul.mubr.msk.bf16.vlgmr.msra.gmra.mrb[24].mxu1 %vm284_vm3, %v3800_v3  ;;  %v1298_v38 = vsel %vm1295_vm10, %v4152_v46, %v1294_v28  ;;  %v1414_v42 = vsel %vm1411_vm11, %v4180_v53, %v1410_v30  ;;  %vm2919_vm10 = vcmask 367616   ;;  %vm3035_vm11 = vcmask 359424  }
  0xe9   : > { %3547 = vmatpush3.bf16.msra.mxu1 %v1066_v25  ;;  %3548 = vmatprep.mubr.msk.bf16.mxu1 %vm3836_vm0, %v3835_v4 }
  0xea   : > { %3552 = vmatprep.subr.bf16.mxu1 %v3835_v4 }
  0xeb   : > { %v4303_v31 = vpop.permute.xlu0 %1985  ;;  %v4310_v33 = vpop.permute.xlu1 %1987 }
  0xec   : > { %v1993_v13 = vsel %vm1991_vm1, %v4303_v31, %v4310_v33 }
  0xed   : > { %3360 = vmatmul.mubr.msk.bf16.vlgmr.msra.gmra.mrb[0].mxu0 %vm284_vm3, %v3802_v26 }
  0xee   : > { %1306 = vmatpush1.bf16.msra.mxu0 %v1296_v27  ;;  %1337 = vmatprep.mubr.bf16.mxu0 %v3827_v0  ;;  %v3811_v27 = vld [vmem:[%s4636_s1 + $0x88] sm:$0xff]  }
  0xef   : > { %1421 = vmatprep.subr.bf16.mxu0 %v1413_v29  ;;  %v4316_v35 = vpop.permute.xlu0 %1983  ;;  %v1526_v37 = vpop.permute.xlu1 %1525 }
  0xf0   : > { %3549 = vmatmul.mubr.msk.bf16.vlgmr.msra.gmra.mrb[28].mxu1 %vm284_vm3, %v3801_v17  ;;  %v1530_v48 = vsel %vm1527_vm12, %v4207_v62, %v1526_v37  ;;  %v1992_v19 = vsel %vm1991_vm1, %v4316_v35, %v4303_v31  ;;  %v3135_v35 = vld [vmem:[%s4637_s2] sm:$0xff] }
  0xf1   : > { %3553 = vmatpush3.bf16.msra.mxu1 %v1182_v32  ;;  %3554 = vmatprep.mubr.msk.bf16.mxu1 %vm3836_vm0, %v3835_v4 }
  0xf2   : > { %3558 = vmatprep.subr.bf16.mxu1 %v3835_v4  ;;  %3139 = vperm.xlu0 %3786, %v3135_v35  }
  0xf3   : > { %v4331_v40 = vpop.permute.xlu0 %2101  ;;  %v4334_v41 = vpop.permute.xlu1 %2103 }
  0xf4   : > { %v2109_v21 = vsel %vm2107_vm2, %v4331_v40, %v4334_v41 }
  0xf7   : > { %v4344_v44 = vpop.permute.xlu0 %2099  ;;  %v1642_v46 = vpop.permute.xlu1 %1641 }
  0xf8   : > { %3555 = vmatmul.mubr.msk.bf16.vlgmr.msra.gmra.mrb[32].mxu1 %vm284_vm3, %v3802_v26  ;;  %v1646_v54 = vsel %vm1643_vm13, %v4228_v10, %v1642_v46  ;;  %v2108_v29 = vsel %vm2107_vm2, %v4344_v44, %v4331_v40 }
  0xf9   : > { %3559 = vmatpush3.bf16.msra.mxu1 %v1298_v38  ;;  %3365 = vmatmul.mubr.msk.bf16.vlgmr.msra.gmra.mrb[0].mxu0 %vm284_vm3, %v3803_v34 }
  0xfa   : > { %1422 = vmatpush1.bf16.msra.mxu0 %v1412_v36  ;;  %3560 = vmatprep.mubr.msk.bf16.mxu1 %vm3836_vm0, %v3835_v4 }
  0xfb   : > { %3564 = vmatprep.subr.bf16.mxu1 %v3835_v4  ;;  %1537 = vmatprep.subr.bf16.mxu0 %v1529_v39  ;;  %v1758_v49 = vpop.permute.xlu0 %1757  ;;  %v3813_v39 = vld [vmem:[%s4636_s1 + $0x98] sm:$0xff]  }
  0xfc   : > { %1453 = vmatprep.mubr.bf16.mxu0 %v3827_v0  ;;  %v4357_v50 = vpop.permute.xlu1 %2217  ;;  %v1762_v60 = vsel %vm1759_vm14, %v4259_v15, %v1758_v49  ;;  %v3809_v15 = vld [vmem:[%s4636_s1 + $0x78] sm:$0xff]  }
  0xff   : > { %v4366_v52 = vpop.permute.xlu0 %2219 }
 0x100   : > { %3561 = vmatmul.mubr.msk.bf16.vlgmr.msra.gmra.mrb[36].mxu1 %vm284_vm3, %v3803_v34  ;;  %v2225_v30 = vsel %vm2223_vm4, %v4357_v50, %v4366_v52 }
 0x101   : > { %3565 = vmatpush3.bf16.msra.mxu1 %v1414_v42  ;;  %3566 = vmatprep.mubr.msk.bf16.mxu1 %vm3836_vm0, %v3835_v4  ;;  %v4368_v53 = vpop.permute.xlu1 %2215 }
 0x102   : > { %3570 = vmatprep.subr.bf16.mxu1 %v3835_v4  ;;  %v2224_v38 = vsel %vm2223_vm4, %v4368_v53, %v4357_v50 }
 0x103   : > { %v1874_v57 = vpop.permute.xlu0 %1873 }
 0x104   : > { %v1878_v8 = vsel %vm1875_vm15, %v4282_v23, %v1874_v57 }
 0x105   : > { %3370 = vmatmul.mubr.msk.bf16.vlgmr.msra.gmra.mrb[0].mxu0 %vm284_vm3, %v3804_v43  ;;  %v4383_v58 = vpop.permute.xlu1 %2333 }
 0x106   : > { %1538 = vmatpush1.bf16.msra.mxu0 %v1528_v45  ;;  %1569 = vmatprep.mubr.bf16.mxu0 %v3827_v0 }
 0x107   : > { %1653 = vmatprep.subr.bf16.mxu0 %v1645_v47  ;;  %v4394_v61 = vpop.permute.xlu0 %2335  ;;  %v3814_v47 = vld [vmem:[%s4636_s1 + $0xa0] sm:$0xff]  }
 0x108   : > { %3567 = vmatmul.mubr.msk.bf16.vlgmr.msra.gmra.mrb[40].mxu1 %vm284_vm3, %v3804_v43  ;;  %v2341_v40 = vsel %vm2339_vm5, %v4383_v58, %v4394_v61 }
 0x109   : > { %3571 = vmatpush3.bf16.msra.mxu1 %v1530_v48  ;;  %3572 = vmatprep.mubr.msk.bf16.mxu1 %vm3836_vm0, %v3835_v4  ;;  %v4396_v62 = vpop.permute.xlu1 %2331 }
 0x10a   : > { %3576 = vmatprep.subr.bf16.mxu1 %v3835_v4  ;;  %v2340_v49 = vsel %vm2339_vm5, %v4396_v62, %v4383_v58 }
 0x10b   : > { %v1990_v9 = vpop.permute.xlu0 %1989 }
 0x10c   : > { %v1994_v5 = vsel %vm1991_vm1, %v4310_v33, %v1990_v9  ;;  %v3812_v33 = vld [vmem:[%s4636_s1 + $0x90] sm:$0xff]  }
 0x10d   : > { %v2106_v10 = vpop.permute.xlu1 %2105 }
 0x10e   : > { %v2110_v16 = vsel %vm2107_vm2, %v4334_v41, %v2106_v10  ;;  %v3136_v41 = vld [vmem:[%s4637_s2 + $0x8] sm:$0xff] }
 0x10f   : > { %v4416_v3 = vpop.permute.xlu0 %2449  ;;  %3144 = vperm.xlu1 %3787, %v3136_v41  }
 0x110   : > { %3573 = vmatmul.mubr.msk.bf16.vlgmr.msra.gmra.mrb[44].mxu1 %vm284_vm3, %v3805_v51 }
 0x111   : > { %3375 = vmatmul.mubr.msk.bf16.vlgmr.msra.gmra.mrb[0].mxu0 %vm284_vm3, %v3805_v51  ;;  %3577 = vmatpush3.bf16.msra.mxu1 %v1646_v54  ;;  %v4421_v11 = vpop.permute.xlu1 %2451 }
 0x112   : > { %1654 = vmatpush1.bf16.msra.mxu0 %v1644_v55  ;;  %3578 = vmatprep.mubr.msk.bf16.mxu1 %vm3836_vm0, %v3835_v4  ;;  %v2457_v50 = vsel %vm2455_vm6, %v4416_v3, %v4421_v11 }
 0x113   : > { %1769 = vmatprep.subr.bf16.mxu0 %v1761_v56  ;;  %1685 = vmatprep.mubr.bf16.mxu0 %v3827_v0  ;;  %v4433_v2 = vpop.permute.xlu0 %2447  ;;  %v3816_v56 = vld [vmem:[%s4636_s1 + $0xb0] sm:$0xff]  }
 0x114   : > { %3582 = vmatprep.subr.bf16.mxu1 %v3835_v4  ;;  %v2456_v55 = vsel %vm2455_vm6, %v4433_v2, %v4416_v3 }
 0x115   : > { %v2222_v14 = vpop.permute.xlu1 %2221 }
 0x116   : > { %v2226_v23 = vsel %vm2223_vm4, %v4366_v52, %v2222_v14  ;;  %v3815_v52 = vld [vmem:[%s4636_s1 + $0xa8] sm:$0xff]  }
 0x117   : > { %v4444_v17 = vpop.permute.xlu0 %2565 }
 0x118   : > { %3579 = vmatmul.mubr.msk.bf16.vlgmr.msra.gmra.mrb[48].mxu1 %vm284_vm3, %v3806_v59 }
 0x119   : > { %3583 = vmatpush3.bf16.msra.mxu1 %v1762_v60  ;;  %3584 = vmatprep.mubr.msk.bf16.mxu1 %vm3836_vm0, %v3835_v4  ;;  %v4449_v18 = vpop.permute.xlu1 %2567 }
 0x11a   : > { %3588 = vmatprep.subr.bf16.mxu1 %v3835_v4  ;;  %v2573_v57 = vsel %vm2571_vm7, %v4444_v17, %v4449_v18 }
 0x11b   : > { %v4462_v22 = vpop.permute.xlu0 %2563 }
 0x11d   : > { %3380 = vmatmul.mubr.msk.bf16.vlgmr.msra.gmra.mrb[0].mxu0 %vm284_vm3, %v3806_v59  ;;  %v2338_v24 = vpop.permute.xlu1 %2337 }
 0x11e   : > { %1770 = vmatpush1.bf16.msra.mxu0 %v1760_v63  ;;  %1801 = vmatprep.mubr.bf16.mxu0 %v3827_v0  ;;  %v2342_v28 = vsel %vm2339_vm5, %v4394_v61, %v2338_v24  ;;  %v3817_v61 = vld [vmem:[%s4636_s1 + $0xb8] sm:$0xff]   ;;  %v2572_v63 = vsel %vm2571_vm7, %v4462_v22, %v4444_v17 }
 0x11f   : > { %1885 = vmatprep.subr.bf16.mxu0 %v1877_v7  ;;  %v2454_v25 = vpop.permute.xlu0 %2453  ;;  %v3818_v7 = vld [vmem:[%s4636_s1 + $0xc0] sm:$0xff]  }
 0x120   : > { %3585 = vmatmul.mubr.msk.bf16.vlgmr.msra.gmra.mrb[52].mxu1 %vm284_vm3, %v3807_v6  ;;  %v2458_v34 = vsel %vm2455_vm6, %v4421_v11, %v2454_v25 }
 0x121   : > { %3589 = vmatpush3.bf16.msra.mxu1 %v1878_v8  ;;  %3590 = vmatprep.mubr.msk.bf16.mxu1 %vm3836_vm0, %v3835_v4  ;;  %v4471_v26 = vpop.permute.xlu1 %2681 }
 0x122   : > { %3594 = vmatprep.subr.bf16.mxu1 %v3835_v4 }
 0x123   : > { %v4486_v31 = vpop.permute.xlu0 %2683 }
 0x125   : > { %v4488_v32 = vpop.permute.xlu1 %2679 }
 0x126   : > { %v2688_v8 = vsel %vm2687_vm8, %v4488_v32, %v4471_v26 }
 0x127   : > { %v2570_v36 = vpop.permute.xlu0 %2569 }
 0x128   : > { %3591 = vmatmul.mubr.msk.bf16.vlgmr.msra.gmra.mrb[56].mxu1 %vm284_vm3, %v3808_v1  ;;  %v2574_v44 = vsel %vm2571_vm7, %v4449_v18, %v2570_v36 }
 0x129   : > { %3385 = vmatmul.mubr.msk.bf16.vlgmr.msra.gmra.mrb[0].mxu0 %vm284_vm3, %v3807_v6  ;;  %3595 = vmatpush3.bf16.msra.mxu1 %v1994_v5  ;;  %v4502_v37 = vpop.permute.xlu1 %2797  ;;  %v2689_v6 = vsel %vm2687_vm8, %v4471_v26, %v4486_v31 }
 0x12a   : > { %1886 = vmatpush1.bf16.msra.mxu0 %v1876_v12  ;;  %3596 = vmatprep.mubr.msk.bf16.mxu1 %vm3836_vm0, %v3835_v4 }
 0x12b   : > { %2001 = vmatprep.subr.bf16.mxu0 %v1993_v13  ;;  %1917 = vmatprep.mubr.bf16.mxu0 %v3827_v0 }
 0x12c   : > { %3600 = vmatprep.subr.bf16.mxu1 %v3835_v4  ;;  %v4521_v42 = vpop.permute.xlu0 %2799 }
 0x12d   : > { %v4523_v43 = vpop.permute.xlu1 %2795  ;;  %v2805_v9 = vsel %vm2803_vm9, %v4502_v37, %v4521_v42 }
 0x130   : > { %3597 = vmatmul.mubr.msk.bf16.vlgmr.msra.gmra.mrb[60].mxu1 %vm284_vm3, %v3809_v15 }
 0x131   : > { %3601 = vmatpush3.bf16.msra.mxu1 %v2110_v16  ;;  %3602 = vmatprep.mubr.msk.bf16.mxu1 %vm3836_vm0, %v3835_v4  ;;  %v2686_v45 = vpop.permute.xlu0 %2685 }
 0x132   : > { %3606 = vmatprep.subr.bf16.mxu1 %v3835_v4  ;;  %v2802_v46 = vpop.permute.xlu1 %2801  ;;  %v2690_v48 = vsel %vm2687_vm8, %v4486_v31, %v2686_v45 }
 0x133   : > { %v2806_v53 = vsel %vm2803_vm9, %v4521_v42, %v2802_v46 }
 0x135   : > { %3390 = vmatmul.mubr.msk.bf16.vlgmr.msra.gmra.mrb[0].mxu0 %vm284_vm3, %v3808_v1  ;;  %v2914_v10 = vpop.permute.xlu0 %2913 }
 0x136   : > { %2002 = vmatpush1.bf16.msra.mxu0 %v1992_v19  ;;  %2033 = vmatprep.mubr.bf16.mxu0 %v3827_v0  ;;  %v2916_v51 = vpop.permute.xlu1 %2915 }
 0x137   : > { %2117 = vmatprep.subr.bf16.mxu0 %v2109_v21  ;;  %v2921_v3 = vsel %vm2919_vm10, %v2914_v10, %v2916_v51 }
 0x138   : > { %3603 = vmatmul.mubr.msk.bf16.vlgmr.msra.gmra.mrb[64].mxu1 %vm284_vm3, %v3810_v20 }
 0x139   : > { %3607 = vmatpush3.bf16.msra.mxu1 %v2226_v23  ;;  %3608 = vmatprep.mubr.msk.bf16.mxu1 %vm3836_vm0, %v3835_v4  ;;  %v2912_v13 = vpop.permute.xlu0 %2911 }
 0x13a   : > { %3612 = vmatprep.subr.bf16.mxu1 %v3835_v4  ;;  %v2918_v54 = vpop.permute.xlu1 %2917  ;;  %v2920_v2 = vsel %vm2919_vm10, %v2912_v13, %v2914_v10 }
 0x13b   : > { %v2922_v59 = vsel %vm2919_vm10, %v2916_v51, %v2918_v54 }
 0x13e   : > { %v3032_v58 = vpop.permute.xlu1 %3031 }
 0x13f   : > { %v3030_v14 = vpop.permute.xlu0 %3029 }
 0x140   : > { %3609 = vmatmul.mubr.msk.bf16.vlgmr.msra.gmra.mrb[68].mxu1 %vm284_vm3, %v3811_v27  ;;  %v3037_v16 = vsel %vm3035_vm11, %v3030_v14, %v3032_v58 }
 0x141   : > { %3395 = vmatmul.mubr.msk.bf16.vlgmr.msra.gmra.mrb[0].mxu0 %vm284_vm3, %v3809_v15  ;;  %3613 = vmatpush3.bf16.msra.mxu1 %v2342_v28 }
 0x142   : > { %2118 = vmatpush1.bf16.msra.mxu0 %v2108_v29  ;;  %3614 = vmatprep.mubr.msk.bf16.mxu1 %vm3836_vm0, %v3835_v4  ;;  %v3034_v60 = vpop.permute.xlu1 %3033 }
 0x143   : > { %2233 = vmatprep.subr.bf16.mxu0 %v2225_v30  ;;  %2149 = vmatprep.mubr.bf16.mxu0 %v3827_v0  ;;  %v3038_v62 = vsel %vm3035_vm11, %v3032_v58, %v3034_v60 }
 0x144   : > { %3618 = vmatprep.subr.bf16.mxu1 %v3835_v4  ;;  %v3028_v23 = vpop.permute.xlu0 %3027 }
 0x145   : > { %v3036_v29 = vsel %vm3035_vm11, %v3028_v23, %v3030_v14 }
 0x148   : > { %3615 = vmatmul.mubr.msk.bf16.vlgmr.msra.gmra.mrb[72].mxu1 %vm284_vm3, %v3812_v33 }
 0x149   : > { %3619 = vmatpush3.bf16.msra.mxu1 %v2458_v34  ;;  %3620 = vmatprep.mubr.msk.bf16.mxu1 %vm3836_vm0, %v3835_v4 }
 0x14a   : > { %3624 = vmatprep.subr.bf16.mxu1 %v3835_v4 }
 0x14d   : > { %3400 = vmatmul.mubr.msk.bf16.vlgmr.msra.gmra.mrb[0].mxu0 %vm284_vm3, %v3810_v20 }
 0x14e   : > { %2234 = vmatpush1.bf16.msra.mxu0 %v2224_v38  ;;  %2265 = vmatprep.mubr.bf16.mxu0 %v3827_v0 }
 0x14f   : > { %2349 = vmatprep.subr.bf16.mxu0 %v2341_v40 }
 0x150   : > { %3621 = vmatmul.mubr.msk.bf16.vlgmr.msra.gmra.mrb[76].mxu1 %vm284_vm3, %v3813_v39 }
 0x151   : > { %3625 = vmatpush3.bf16.msra.mxu1 %v2574_v44  ;;  %3626 = vmatprep.mubr.msk.bf16.mxu1 %vm3836_vm0, %v3835_v4 }
 0x152   : > { %3630 = vmatprep.subr.bf16.mxu1 %v3835_v4 }
 0x158   : > { %3627 = vmatmul.mubr.msk.bf16.vlgmr.msra.gmra.mrb[80].mxu1 %vm284_vm3, %v3814_v47 }
 0x159   : > { %3405 = vmatmul.mubr.msk.bf16.vlgmr.msra.gmra.mrb[0].mxu0 %vm284_vm3, %v3811_v27  ;;  %3631 = vmatpush3.bf16.msra.mxu1 %v2690_v48 }
 0x15a   : > { %2350 = vmatpush1.bf16.msra.mxu0 %v2340_v49  ;;  %3632 = vmatprep.mubr.msk.bf16.mxu1 %vm3836_vm0, %v3835_v4 }
 0x15b   : > { %2465 = vmatprep.subr.bf16.mxu0 %v2457_v50  ;;  %2381 = vmatprep.mubr.bf16.mxu0 %v3827_v0 }
 0x15c   : > { %3636 = vmatprep.subr.bf16.mxu1 %v3835_v4 }
 0x160   : > { %3633 = vmatmul.mubr.msk.bf16.vlgmr.msra.gmra.mrb[84].mxu1 %vm284_vm3, %v3815_v52 }
 0x161   : > { %3637 = vmatpush3.bf16.msra.mxu1 %v2806_v53  ;;  %3638 = vmatprep.mubr.msk.bf16.mxu1 %vm3836_vm0, %v3835_v4 }
 0x162   : > { %3642 = vmatprep.subr.bf16.mxu1 %v3835_v4 }
 0x165   : > { %3410 = vmatmul.mubr.msk.bf16.vlgmr.msra.gmra.mrb[0].mxu0 %vm284_vm3, %v3812_v33 }
 0x166   : > { %2466 = vmatpush1.bf16.msra.mxu0 %v2456_v55  ;;  %2497 = vmatprep.mubr.bf16.mxu0 %v3827_v0 }
 0x167   : > { %2581 = vmatprep.subr.bf16.mxu0 %v2573_v57 }
 0x168   : > { %3639 = vmatmul.mubr.msk.bf16.vlgmr.msra.gmra.mrb[88].mxu1 %vm284_vm3, %v3816_v56 }
 0x169   : > { %3643 = vmatpush3.bf16.msra.mxu1 %v2922_v59  ;;  %3644 = vmatprep.mubr.msk.bf16.mxu1 %vm3836_vm0, %v3835_v4 }
 0x16a   : > { %3648 = vmatprep.subr.bf16.mxu1 %v3835_v4 }
 0x170   : > { %3645 = vmatmul.mubr.msk.bf16.vlgmr.msra.gmra.mrb[92].mxu1 %vm284_vm3, %v3817_v61 }
 0x171   : > { %3415 = vmatmul.mubr.msk.bf16.vlgmr.msra.gmra.mrb[0].mxu0 %vm284_vm3, %v3813_v39  ;;  %3649 = vmatpush3.bf16.msra.mxu1 %v3038_v62 }
 0x172   : > { %2582 = vmatpush1.bf16.msra.mxu0 %v2572_v63  ;;  %3650 = vmatprep.mubr.msk.bf16.mxu1 %vm3836_vm0, %v3835_v4  ;;  %v2804_v4 = vsel %vm2803_vm9, %v4523_v43, %v4502_v37  ;;  %vm3214_vm0 = vcmask 7168  }
 0x173   : > { %2697 = vmatprep.subr.bf16.mxu0 %v2689_v6  ;;  %2613 = vmatprep.mubr.bf16.mxu0 %v3827_v0 }
 0x178   : > { %3651 = vmatmul.mubr.msk.bf16.vlgmr.msra.gmra.mrb[96].mxu1 %vm284_vm3, %v3818_v7 }
 0x17d   : > { %3420 = vmatmul.mubr.msk.bf16.vlgmr.msra.gmra.mrb[0].mxu0 %vm284_vm3, %v3814_v47 }
 0x17e   : > { %2698 = vmatpush1.bf16.msra.mxu0 %v2688_v8  ;;  %2729 = vmatprep.mubr.bf16.mxu0 %v3827_v0 }
 0x17f   : > { %2813 = vmatprep.subr.bf16.mxu0 %v2805_v9 }
 0x189   : > { %3425 = vmatmul.mubr.msk.bf16.vlgmr.msra.gmra.mrb[0].mxu0 %vm284_vm3, %v3815_v52 }
 0x18a   : > { %2814 = vmatpush1.bf16.msra.mxu0 %v2804_v4  ;;  %2845 = vmatprep.mubr.bf16.mxu0 %v3827_v0 }
 0x18b   : > { %2929 = vmatprep.subr.bf16.mxu0 %v2921_v3  ;;  %v365_v1 = vpop.f32.mrb[0].mxu1 }
 0x18c   : > { %v3508_v11 = vpop.f32.mrb[1].mxu1 }
 0x18d   : > { %v368_v5 = vpop.f32.mrb[2].mxu1 }
 0x18e   : > { %v3509_v12 = vpop.f32.mrb[3].mxu1 }
 0x193   : > { %v460_v15 = vpop.f32.mrb[4].mxu1 }
 0x194   : > { %v461_v17 = vadd.f32 %v460_v15, %v365_v1  ;;  %v3514_v18 = vpop.f32.mrb[5].mxu1 }
 0x195   : > { %3430 = vmatmul.mubr.msk.bf16.vlgmr.msra.gmra.mrb[0].mxu0 %vm284_vm3, %v3816_v56  ;;  %v463_v19 = vpop.f32.mrb[6].mxu1 }
 0x196   : > { %2930 = vmatpush1.bf16.msra.mxu0 %v2920_v2  ;;  %2961 = vmatprep.mubr.bf16.mxu0 %v3827_v0  ;;  %v464_v20 = vadd.f32 %v463_v19, %v368_v5  ;;  %v3515_v21 = vpop.f32.mrb[7].mxu1 }
 0x197   : > { %3045 = vmatprep.subr.bf16.mxu0 %v3037_v16 }
 0x19b   : > { %v570_v22 = vpop.f32.mrb[8].mxu1 }
 0x19c   : > { %v579_v24 = vadd.f32 %v570_v22, %v461_v17  ;;  %v3520_v25 = vpop.f32.mrb[9].mxu1 }
 0x19d   : > { %v573_v26 = vpop.f32.mrb[10].mxu1 }
 0x19e   : > { %v582_v27 = vadd.f32 %v573_v26, %v464_v20  ;;  %v3521_v28 = vpop.f32.mrb[11].mxu1 }
 0x1a1   : > { %3435 = vmatmul.mubr.msk.bf16.vlgmr.msra.gmra.mrb[0].mxu0 %vm284_vm3, %v3817_v61 }
 0x1a2   : > { %3046 = vmatpush1.bf16.msra.mxu0 %v3036_v29  ;;  %3077 = vmatprep.mubr.bf16.mxu0 %v3827_v0 }
 0x1a3   : > { %v686_v30 = vpop.f32.mrb[12].mxu1 }
 0x1a4   : > { %v695_v31 = vadd.f32 %v686_v30, %v579_v24  ;;  %v3526_v32 = vpop.f32.mrb[13].mxu1 }
 0x1a5   : > { %v689_v33 = vpop.f32.mrb[14].mxu1 }
 0x1a6   : > { %v698_v34 = vadd.f32 %v689_v33, %v582_v27  ;;  %v3527_v35 = vpop.f32.mrb[15].mxu1 }
 0x1ab   : > { %v802_v36 = vpop.f32.mrb[16].mxu1 }
 0x1ac   : > { %v811_v37 = vadd.f32 %v802_v36, %v695_v31  ;;  %v3532_v38 = vpop.f32.mrb[17].mxu1 }
 0x1ad   : > { %3440 = vmatmul.mubr.msk.bf16.vlgmr.msra.gmra.mrb[0].mxu0 %vm284_vm3, %v3818_v7  ;;  %v805_v39 = vpop.f32.mrb[18].mxu1 }
 0x1ae   : > { %v814_v40 = vadd.f32 %v805_v39, %v698_v34  ;;  %v3533_v41 = vpop.f32.mrb[19].mxu1 }
 0x1b3   : > { %v918_v42 = vpop.f32.mrb[20].mxu1 }
 0x1b4   : > { %v927_v43 = vadd.f32 %v918_v42, %v811_v37  ;;  %v3538_v44 = vpop.f32.mrb[21].mxu1 }
 0x1b5   : > { %v921_v45 = vpop.f32.mrb[22].mxu1 }
 0x1b6   : > { %v930_v46 = vadd.f32 %v921_v45, %v814_v40  ;;  %v3539_v0 = vpop.f32.mrb[23].mxu1 }
 0x1bb   : > { %v1034_v47 = vpop.f32.mrb[24].mxu1 }
 0x1bc   : > { %v1043_v48 = vadd.f32 %v1034_v47, %v927_v43  ;;  %v3544_v49 = vpop.f32.mrb[25].mxu1 }
 0x1bd   : > { %v1037_v50 = vpop.f32.mrb[26].mxu1 }
 0x1be   : > { %v1046_v51 = vadd.f32 %v1037_v50, %v930_v46  ;;  %v3545_v52 = vpop.f32.mrb[27].mxu1 }
 0x1c3   : > { %v1150_v53 = vpop.f32.mrb[28].mxu1 }
 0x1c4   : > { %v1159_v54 = vadd.f32 %v1150_v53, %v1043_v48  ;;  %v3550_v55 = vpop.f32.mrb[29].mxu1 }
 0x1c5   : > { %v1153_v56 = vpop.f32.mrb[30].mxu1 }
 0x1c6   : > { %v1162_v57 = vadd.f32 %v1153_v56, %v1046_v51  ;;  %v3551_v58 = vpop.f32.mrb[31].mxu1 }
 0x1cb   : > { %v1266_v59 = vpop.f32.mrb[32].mxu1 }
 0x1cc   : > { %v1275_v60 = vadd.f32 %v1266_v59, %v1159_v54  ;;  %v3556_v61 = vpop.f32.mrb[33].mxu1 }
 0x1cd   : > { %v1269_v62 = vpop.f32.mrb[34].mxu1 }
 0x1ce   : > { %v1278_v63 = vadd.f32 %v1269_v62, %v1162_v57  ;;  %v3557_v6 = vpop.f32.mrb[35].mxu1 }
 0x1d3   : > { %v1382_v7 = vpop.f32.mrb[36].mxu1 }
 0x1d4   : > { %v1391_v8 = vadd.f32 %v1382_v7, %v1275_v60  ;;  %v3562_v9 = vpop.f32.mrb[37].mxu1 }
 0x1d5   : > { %v1385_v4 = vpop.f32.mrb[38].mxu1 }
 0x1d6   : > { %v1394_v10 = vadd.f32 %v1385_v4, %v1278_v63  ;;  %v3563_v3 = vpop.f32.mrb[39].mxu1 }
 0x1db   : > { %v1498_v1 = vpop.f32.mrb[40].mxu1 }
 0x1dc   : > { %v1507_v11 = vadd.f32 %v1498_v1, %v1391_v8  ;;  %v3568_v5 = vpop.f32.mrb[41].mxu1 }
 0x1dd   : > { %v1501_v12 = vpop.f32.mrb[42].mxu1 }
 0x1de   : > { %v1510_v13 = vadd.f32 %v1501_v12, %v1394_v10  ;;  %v3569_v2 = vpop.f32.mrb[43].mxu1 }
 0x1e3   : > { %v1614_v14 = vpop.f32.mrb[44].mxu1 }
 0x1e4   : > { %v1623_v15 = vadd.f32 %v1614_v14, %v1507_v11  ;;  %v3574_v16 = vpop.f32.mrb[45].mxu1 }
 0x1e5   : > { %v1617_v17 = vpop.f32.mrb[46].mxu1 }
 0x1e6   : > { %v1626_v18 = vadd.f32 %v1617_v17, %v1510_v13  ;;  %v3575_v19 = vpop.f32.mrb[47].mxu1 }
 0x1eb   : > { %v1730_v20 = vpop.f32.mrb[48].mxu1 }
 0x1ec   : > { %v1739_v21 = vadd.f32 %v1730_v20, %v1623_v15  ;;  %v3580_v22 = vpop.f32.mrb[49].mxu1 }
 0x1ed   : > { %v1733_v23 = vpop.f32.mrb[50].mxu1  ;;  %v3161_v22 = vlaneseq }
 0x1ee   : > { %v1742_v24 = vadd.f32 %v1733_v23, %v1626_v18  ;;  %v3581_v25 = vpop.f32.mrb[51].mxu1 }
 0x1f3   : > { %v1846_v26 = vpop.f32.mrb[52].mxu1 }
 0x1f4   : > { %v1855_v27 = vadd.f32 %v1846_v26, %v1739_v21  ;;  %v3586_v28 = vpop.f32.mrb[53].mxu1 }
 0x1f5   : > { %v1849_v29 = vpop.f32.mrb[54].mxu1 }
 0x1f6   : > { %v1858_v30 = vadd.f32 %v1849_v29, %v1742_v24  ;;  %v3587_v31 = vpop.f32.mrb[55].mxu1  ;;  %v3162_v29 = vshrl.u32 %v3161_v22, 7 }
 0x1fb   : > { %v1962_v32 = vpop.f32.mrb[56].mxu1 }
 0x1fc   : > { %v1971_v33 = vadd.f32 %v1962_v32, %v1855_v27  ;;  %v3592_v34 = vpop.f32.mrb[57].mxu1  ;;  %v3140_v32 = vpop.permute.xlu0 %3139 }
 0x1fd   : > { %v1965_v35 = vpop.f32.mrb[58].mxu1 }
 0x1fe   : > { %v1974_v36 = vadd.f32 %v1965_v35, %v1858_v30  ;;  %v3593_v37 = vpop.f32.mrb[59].mxu1  ;;  %v3171_v30 = vsub.s32 2, %v3162_v29 }
 0x1ff   : > { %v3145_v37 = vpop.permute.xlu1 %3144 }
 0x203   : > { %v2078_v38 = vpop.f32.mrb[60].mxu1 }
 0x204   : > { %v2087_v39 = vadd.f32 %v2078_v38, %v1971_v33  ;;  %v3598_v40 = vpop.f32.mrb[61].mxu1  ;;  %v3159_v33 = vld [vmem:[%s4638_s3] sm:$0x7] }
 0x205   : > { %v2081_v41 = vpop.f32.mrb[62].mxu1 }
 0x206   : > { %v2090_v42 = vadd.f32 %v2081_v41, %v1974_v36  ;;  %v3599_v43 = vpop.f32.mrb[63].mxu1  ;;  %v3172_v41 = vrot.slane %v3159_v33, %v3171_v30 }
 0x20b   : > { %v2194_v44 = vpop.f32.mrb[64].mxu1 }
 0x20c   : > { %v2203_v45 = vadd.f32 %v2194_v44, %v2087_v39  ;;  %v3604_v46 = vpop.f32.mrb[65].mxu1 }
 0x20d   : > { %v2197_v0 = vpop.f32.mrb[66].mxu1 }
 0x20e   : > { %v2206_v47 = vadd.f32 %v2197_v0, %v2090_v42  ;;  %v3605_v48 = vpop.f32.mrb[67].mxu1 }
 0x20f   : > { %v3163_v48 = vsub.s32 0, %v3162_v29 }
 0x213   : > { %v2310_v49 = vpop.f32.mrb[68].mxu1 }
 0x214   : > { %v2319_v50 = vadd.f32 %v2310_v49, %v2203_v45  ;;  %v3610_v51 = vpop.f32.mrb[69].mxu1  ;;  %v3167_v49 = vsub.s32 1, %v3162_v29 }
 0x215   : > { %v2313_v52 = vpop.f32.mrb[70].mxu1 }
 0x216   : > { %v2322_v53 = vadd.f32 %v2313_v52, %v2206_v47  ;;  %v3611_v54 = vpop.f32.mrb[71].mxu1  ;;  %v3164_v52 = vrot.slane %v3159_v33, %v3163_v48 }
 0x21b   : > { %v2426_v55 = vpop.f32.mrb[72].mxu1 }
 0x21c   : > { %v2435_v56 = vadd.f32 %v2426_v55, %v2319_v50  ;;  %v3616_v57 = vpop.f32.mrb[73].mxu1  ;;  %v3168_v55 = vrot.slane %v3159_v33, %v3167_v49 }
 0x21d   : > { %v2429_v58 = vpop.f32.mrb[74].mxu1 }
 0x21e   : > { %v2438_v59 = vadd.f32 %v2429_v58, %v2322_v53  ;;  %v3617_v60 = vpop.f32.mrb[75].mxu1 }
 0x223   : > { %v2542_v61 = vpop.f32.mrb[76].mxu1 }
 0x224   : > { %v2551_v62 = vadd.f32 %v2542_v61, %v2435_v56  ;;  %v3622_v63 = vpop.f32.mrb[77].mxu1 }
 0x225   : > { %v2545_v6 = vpop.f32.mrb[78].mxu1 }
 0x226   : > { %v2554_v7 = vadd.f32 %v2545_v6, %v2438_v59  ;;  %v3623_v8 = vpop.f32.mrb[79].mxu1 }
 0x22b   : > { %v2658_v9 = vpop.f32.mrb[80].mxu1 }
 0x22c   : > { %v2667_v4 = vadd.f32 %v2658_v9, %v2551_v62  ;;  %v3628_v10 = vpop.f32.mrb[81].mxu1 }
 0x22d   : > { %v2661_v3 = vpop.f32.mrb[82].mxu1 }
 0x22e   : > { %v2670_v1 = vadd.f32 %v2661_v3, %v2554_v7  ;;  %v3629_v11 = vpop.f32.mrb[83].mxu1 }
 0x233   : > { %v2774_v5 = vpop.f32.mrb[84].mxu1 }
 0x234   : > { %v2783_v12 = vadd.f32 %v2774_v5, %v2667_v4  ;;  %v3634_v13 = vpop.f32.mrb[85].mxu1 }
 0x235   : > { %v2777_v2 = vpop.f32.mrb[86].mxu1 }
 0x236   : > { %v2786_v14 = vadd.f32 %v2777_v2, %v2670_v1  ;;  %v3635_v15 = vpop.f32.mrb[87].mxu1 }
 0x23b   : > { %v2890_v16 = vpop.f32.mrb[88].mxu1 }
 0x23c   : > { %v2899_v17 = vadd.f32 %v2890_v16, %v2783_v12  ;;  %v3640_v18 = vpop.f32.mrb[89].mxu1 }
 0x23d   : > { %v2893_v19 = vpop.f32.mrb[90].mxu1 }
 0x23e   : > { %v2902_v20 = vadd.f32 %v2893_v19, %v2786_v14  ;;  %v3641_v21 = vpop.f32.mrb[91].mxu1 }
 0x243   : > { %v3006_v23 = vpop.f32.mrb[92].mxu1 }
 0x244   : > { %v3015_v24 = vadd.f32 %v3006_v23, %v2899_v17  ;;  %v3646_v25 = vpop.f32.mrb[93].mxu1 }
 0x245   : > { %v3009_v26 = vpop.f32.mrb[94].mxu1 }
 0x246   : > { %v3018_v27 = vadd.f32 %v3009_v26, %v2902_v20  ;;  %v3647_v28 = vpop.f32.mrb[95].mxu1 }
 0x24b   : > { %v3122_v31 = vpop.f32.mrb[96].mxu1 }
 0x24c   : > { %v3131_v34 = vadd.f32 %v3122_v31, %v3015_v24  ;;  %v3652_v35 = vpop.f32.mrb[97].mxu1 }
 0x24d   : > { %v3125_v36 = vpop.f32.mrb[98].mxu1 }
 0x24e   : > { %v3149_v38 = vadd.f32 %v3140_v32, %v3131_v34  ;;  %v3134_v39 = vadd.f32 %v3125_v36, %v3018_v27  ;;  %v3653_v40 = vpop.f32.mrb[99].mxu1 }
 0x250   : > { %v3155_v42 = vmax.f32 %v3149_v38, 0.0  ;;  %v3152_v43 = vadd.f32 %v3145_v37, %v3134_v39 }
 0x252   : > { %v3158_v44 = vmax.f32 %v3152_v43, 0.0  ;;  %v3178_v45 = vmul.f32 %v3172_v41, %v3155_v42 }
 0x254   : > { %v3451_v46 = vpack.c.bf16 %v3178_v45, %v3178_v45  ;;  %v3181_v0 = vmul.f32 %v3172_v41, %v3158_v44 }
 0x256   : > { %3203 = vst [vmem:[%s4622_s13 + $0x8] sm:$0xf] %v3451_v46  ;;  %v3453_v47 = vpack.c.bf16 %v3181_v0, %v3181_v0 }
 0x258   : > { %3205 = vst [vmem:[%s4622_s13 + $0x14] sm:$0xf] %v3453_v47 }
 0x280   : > { %v3079_v50 = vpop.f32.mrb[0].mxu0 }
 0x281   : > { %v3147_v51 = vadd.f32 %v3140_v32, %v3079_v50  ;;  %v3081_v53 = vpop.f32.mrb[1].mxu0 }
 0x282   : > { %v3148_v54 = vadd.f32 %v3140_v32, %v3081_v53  ;;  %v3083_v56 = vpop.f32.mrb[2].mxu0 }
 0x283   : > { %v3153_v57 = vmax.f32 %v3147_v51, 0.0  ;;  %v3150_v58 = vadd.f32 %v3145_v37, %v3083_v56  ;;  %v3085_v59 = vpop.f32.mrb[3].mxu0 }
 0x284   : > { %v3154_v60 = vmax.f32 %v3148_v54, 0.0  ;;  %v3151_v61 = vadd.f32 %v3145_v37, %v3085_v59 }
 0x285   : > { %v3176_v62 = vmul.f32 %v3164_v52, %v3153_v57  ;;  %v3156_v63 = vmax.f32 %v3150_v58, 0.0 }
 0x286   : > { %v3177_v6 = vmul.f32 %v3168_v55, %v3154_v60  ;;  %v3157_v7 = vmax.f32 %v3151_v61, 0.0 }
 0x287   : > { %v3179_v8 = vmul.f32 %v3164_v52, %v3156_v63 }
 0x288   : > { %v3450_v9 = vpack.c.bf16 %v3177_v6, %v3176_v62  ;;  %v3206_v4 = vadd.f32 %v3177_v6, %v3176_v62  ;;  %v3180_v10 = vmul.f32 %v3168_v55, %v3157_v7 }
 0x28a   : > { %3202 = vst [vmem:[%s4622_s13] sm:$0xff] %v3450_v9  ;;  %v3452_v3 = vpack.c.bf16 %v3180_v10, %v3179_v8  ;;  %v3210_v1 = vadd.f32 %v3180_v10, %v3179_v8  ;;  %v3207_v11 = vadd.f32 %v3206_v4, %v3178_v45 }
 0x28c   : > { %3204 = vst [vmem:[%s4622_s13 + $0xc] sm:$0xff] %v3452_v3  ;;  %3208 = vadd.xlane.f32.xlu1 %v3207_v11  ;;  %v3211_v5 = vadd.f32 %v3210_v1, %v3181_v0 }
 0x28e   : > { %3212 = vadd.xlane.f32.xlu0 %v3211_v5 }
 0x319   : > { %v3209_v12 = vpop.xlane.xlu1 %3208 }
 0x31a   : > { %3215 = vst.msk [vmem:[%s237_s17] sm:$0xff] %vm3214_vm0, %v3209_v12 }
 0x31b   : > { %v3213_v13 = vpop.xlane.xlu0 %3212 }
 0x31c   : > { %3216 = vst.msk [vmem:[%s237_s17 + $0x8] sm:$0xff] %vm3214_vm0, %v3213_v13 }
 0x31d PF: > { %s16_s18 = sadd.s32 1, %s3825_s18  }
 0x31e   : > { %p13_p4 = scmp.ge.s32.totalorder %s16_s18, 4  }
 0x320   :  { %15 = sbr.rel (!%p13_p4) target bundleno = 1 (0x1), region = 102 }

</bundles_post_ra>
